<compile_context>
chip_gen: v7x
topology: tpu7x:2x2x1
jax: 0.10.0
libtpu: 0.0.40
codegen_flags: <defaults>
</compile_context>

<pallas_src>
import jax
import jax.numpy as jnp
from jax.experimental import pallas as pl
from jax.experimental.pallas import tpu as pltpu

EPS = 1e-5
LEAKY_SLOPE = 0.1
GROUP_SIZE = 16  # GroupNorm(out_feat // 16, out_feat) -> 16 channels per group


def _round_up(x, m):
    return ((x + m - 1) // m) * m


def _mlp_fused_kernel(x_ref, w_ref, bias_ref, gamma_ref, beta_ref, m_ref, mt_ref, o_ref):
    """Fused Conv1d(k=1)+GroupNorm+LeakyReLU stack for a block of B samples.

    x_ref     : (B, L, C)      bf16 activations (channels padded to C, lane-dense)
    w_ref     : (nl, C, C)     bf16 conv weights, transposed to (C_in, C_out), zero padded
    bias_ref  : (nl, 1, C)     f32 conv bias   (padded channels = 0)
    gamma_ref : (nl, 1, C)     f32 GN scale    (padded channels = 0 -> padded lanes stay 0)
    beta_ref  : (nl, 1, C)     f32 GN shift    (padded channels = 0)
    m_ref     : (C, G)         f32 one-hot channel->group (per-group reduction)
    mt_ref    : (G, C)         f32 its transpose (group->channel scatter)
    o_ref     : (B, L, C)      bf16 output of the last layer
    """
    B, L, C = x_ref.shape
    n_layers = w_ref.shape[0]
    inv_cnt = 1.0 / float(L * GROUP_SIZE)   # elements per (sample, group)

    x = x_ref[...]               # (B, L, C) bf16 — resident activation
    m = m_ref[...]               # (C, G)
    mt = mt_ref[...]             # (G, C)

    y = None
    # TODO(synk): for deep stacks (8+ layers) switch to lax.fori_loop over the stacked
    # weights; the static unroll is fine at n_layers == 2 but inflates vreg pressure.
    for l in range(n_layers):
        w = w_ref[l]             # (C, C) bf16
        bias = bias_ref[l]       # (1, C) f32
        gamma = gamma_ref[l]     # (1, C) f32
        beta = beta_ref[l]       # (1, C) f32

        # 1x1 conv == bf16 MXU matmul with f32 accumulation (bias handled analytically).
        z = jnp.dot(x.reshape(B * L, C), w,
                    preferred_element_type=jnp.float32).reshape(B, L, C)

        # Per-(sample, channel) sums over L: cheap XLU sublane reduce (no one-hot matmul).
        s = jnp.sum(z, axis=1)              # (B, C)
        ss = jnp.sum(z * z, axis=1)         # (B, C)

        # Fold the conv bias b into the statistics of y = z + b:
        #   sum(y)   = sum(z) + L*b
        #   sum(y^2) = sum(z^2) + 2*b*sum(z) + L*b^2
        sum_y = s + float(L) * bias
        ssq_y = ss + 2.0 * bias * s + float(L) * (bias * bias)

        # Per-(sample, group) stats via tiny one-hot matmuls (B x C x G).
        gmean = jnp.dot(sum_y, m, preferred_element_type=jnp.float32) * inv_cnt   # (B, G)
        gmsq = jnp.dot(ssq_y, m, preferred_element_type=jnp.float32) * inv_cnt    # (B, G)
        gvar = jnp.maximum(gmsq - gmean * gmean, 0.0)      # clamp cancellation
        ginv = jax.lax.rsqrt(gvar + EPS)                   # (B, G)

        # Scatter group stats to channels; fold bias + GN into ONE affine per (sample, ch).
        mean_c = jnp.dot(gmean, mt, preferred_element_type=jnp.float32)   # (B, C)
        inv_c = jnp.dot(ginv, mt, preferred_element_type=jnp.float32)     # (B, C)
        a_c = inv_c * gamma                                # (B, C)
        c_c = beta + (bias - mean_c) * a_c                 # (B, C)

        # Apply affine + LeakyReLU directly on the (B, L, C) tile via (B, 1, C) broadcasts:
        # 1 FMA + 1 select per element, no (rows, C) f32 temporaries.
        yn = z * a_c[:, None, :] + c_c[:, None, :]
        y = jnp.where(yn > 0, yn, LEAKY_SLOPE * yn)

        if l + 1 < n_layers:
            x = y.astype(jnp.bfloat16)      # feed the next layer's MXU in bf16

    o_ref[...] = y.astype(o_ref.dtype)      # bf16 store: halves output HBM traffic


def mlp_forward(x_ncl, params):
    """x_ncl: (N, C_in, L) like PyTorch. Returns (N, C_out_last, L) float32."""
    N, C_in, L = x_ncl.shape
    n_layers = len(params)
    c_outs = [int(w.shape[0]) for (w, _, _, _) in params]
    for c in c_outs:
        assert c % GROUP_SIZE == 0, "GroupNorm(out//16) requires out_feat % 16 == 0"

    # Pad every channel dim to one common lane-dense width (multiple of 128).
    C_pad = _round_up(max([C_in] + c_outs), 128)
    G_pad = C_pad // GROUP_SIZE

    # Stack zero-padded parameters: padded gamma/beta/bias = 0 keeps padded lanes at 0.
    w_stack = jnp.zeros((n_layers, C_pad, C_pad), jnp.float32)
    b_stack = jnp.zeros((n_layers, 1, C_pad), jnp.float32)
    g_stack = jnp.zeros((n_layers, 1, C_pad), jnp.float32)
    bt_stack = jnp.zeros((n_layers, 1, C_pad), jnp.float32)
    for l, (w, b, gamma, beta) in enumerate(params):
        co, ci = w.shape
        w_stack = w_stack.at[l, :ci, :co].set(jnp.asarray(w, jnp.float32).T)
        b_stack = b_stack.at[l, 0, :co].set(jnp.asarray(b, jnp.float32))
        g_stack = g_stack.at[l, 0, :co].set(jnp.asarray(gamma, jnp.float32))
        bt_stack = bt_stack.at[l, 0, :co].set(jnp.asarray(beta, jnp.float32))
    w_stack = w_stack.astype(jnp.bfloat16)

    # Single input transpose + channel pad + bf16 cast (once total, not per layer).
    # TODO(synk): DMA x at its true channel width and zero-pad in VMEM to cut input HBM 4x.
    x = jnp.transpose(x_ncl, (0, 2, 1))                                   # (N, L, C_in)
    x = jnp.pad(x, ((0, 0), (0, 0), (0, C_pad - C_in))).astype(jnp.bfloat16)

    # Batch blocking: target ~256 matmul rows per grid step (fills the 256-wide MXU on
    # v6e/v7x, amortizes per-step overhead on v5e/v6e's single TC). Awkward N is padded
    # UP rather than shrinking B_blk. For v7x's 2 TCs prefer N >= 2*B_blk (even grid).
    B_blk = max(1, min(N, 256 // max(L, 1)))
    N_pad = _round_up(N, B_blk)
    if N_pad > N:
        x = jnp.pad(x, ((0, N_pad - N), (0, 0), (0, 0)))
    grid = (N_pad // B_blk,)

    # One-hot channel->group reduction/scatter helpers (tiny MXU matmuls).
    ch = jnp.arange(C_pad)
    m = (ch[:, None] // GROUP_SIZE == jnp.arange(G_pad)[None, :]).astype(jnp.float32)
    mt = m.T

    grid_spec = pltpu.PrefetchScalarGridSpec(
        num_scalar_prefetch=0,
        grid=grid,
        in_specs=[
            pl.BlockSpec((B_blk, L, C_pad), lambda n: (n, 0, 0)),          # x
            # Grid-invariant operands below. At production sizes (C_pad >= 512, many
            # layers) single-buffer them (pipeline_mode=pl.Buffered(1)) for v7x VMEM.
            pl.BlockSpec((n_layers, C_pad, C_pad), lambda n: (0, 0, 0)),   # weights
            pl.BlockSpec((n_layers, 1, C_pad), lambda n: (0, 0, 0)),       # bias
            pl.BlockSpec((n_layers, 1, C_pad), lambda n: (0, 0, 0)),       # gamma
            pl.BlockSpec((n_layers, 1, C_pad), lambda n: (0, 0, 0)),       # beta
            pl.BlockSpec((C_pad, G_pad), lambda n: (0, 0)),                # m
            pl.BlockSpec((G_pad, C_pad), lambda n: (0, 0)),                # m^T
        ],
        out_specs=pl.BlockSpec((B_blk, L, C_pad), lambda n: (n, 0, 0)),
    )

    out = pl.pallas_call(
        _mlp_fused_kernel,
        out_shape=jax.ShapeDtypeStruct((N_pad, L, C_pad), jnp.bfloat16),
        grid_spec=grid_spec,
        compiler_params=pltpu.CompilerParams(
            dimension_semantics=("parallel",),
            vmem_limit_bytes=32 * 1024 * 1024,   # safe on v5e/v6e/v7x; usage is tiny
        ),
    )(x, w_stack, b_stack, g_stack, bt_stack, m, mt)

    # Single output slice + transpose back to PyTorch layout (f32 interface).
    C_last = c_outs[-1]
    return jnp.transpose(out[:N, :, :C_last], (0, 2, 1)).astype(jnp.float32)


def init_mlp_params(key, in_feat, out_feat):
    """Deterministic synthetic parameters mirroring MLP(in_feat, out_feat)."""
    params = []
    last = in_feat
    for i, feat in enumerate(out_feat):
        k_w, k_b, k_g, k_bt = jax.random.split(jax.random.fold_in(key, i), 4)
        scale = 1.0 / jnp.sqrt(jnp.float32(last))
        w = jax.random.uniform(k_w, (feat, last), jnp.float32, -scale, scale)   # Conv1d weight (C_out, C_in)
        b = jax.random.uniform(k_b, (feat,), jnp.float32, -scale, scale)        # Conv1d bias
        gamma = 1.0 + 0.1 * jax.random.normal(k_g, (feat,), jnp.float32)        # GN weight
        beta = 0.1 * jax.random.normal(k_bt, (feat,), jnp.float32)              # GN bias
        params.append((w, b, gamma, beta))
        last = feat
    return params


def mlp_reference(x_ncl, params):
    """Pure-JAX f32 reference matching PyTorch semantics (sanity check)."""
    x = x_ncl
    for (w, b, gamma, beta) in params:
        y = jnp.einsum("oc,ncl->nol", w, x) + b[None, :, None]       # Conv1d k=1
        N, C, L = y.shape
        G = C // GROUP_SIZE
        yg = y.reshape(N, G, GROUP_SIZE, L)
        mean = yg.mean(axis=(2, 3), keepdims=True)
        var = yg.var(axis=(2, 3), keepdims=True)
        yn = ((yg - mean) / jnp.sqrt(var + EPS)).reshape(N, C, L)
        yn = yn * gamma[None, :, None] + beta[None, :, None]
        x = jnp.where(yn > 0, yn, LEAKY_SLOPE * yn)
    return x


if __name__ == "__main__":
    key = jax.random.PRNGKey(0)
    k_x, k_p = jax.random.split(key)

    # Small shapes consistent with the module; B_blk=16, L=16 -> 256 matmul rows, grid=(1,).
    N, C_IN, L = 16, 32, 16
    OUT_FEAT = [32, 64]

    x = jax.random.normal(k_x, (N, C_IN, L), jnp.float32)   # PyTorch layout (N, C, L)
    params = init_mlp_params(k_p, C_IN, OUT_FEAT)

    fwd = jax.jit(mlp_forward)
    out = jax.block_until_ready(fwd(x, params))

    ref = mlp_reference(x, params)
    assert out.shape == (N, OUT_FEAT[-1], L), out.shape
    max_err = float(jnp.max(jnp.abs(out - ref)))
    # bf16 MXU path + bf16 output vs. f32 reference -> modest tolerance.
    assert jnp.allclose(out, ref, atol=5e-2, rtol=5e-2), max_err

    print("KERNEL_OK")
</pallas_src>

<mosaic_0001>
module attributes {stable_mosaic.version = 11 : i64} {
  func.func @_mlp_fused_kernel(%arg0: i32, %arg1: memref<16x16x128xbf16, #tpu.memory_space<vmem>>, %arg2: memref<2x128x128xbf16, #tpu.memory_space<vmem>>, %arg3: memref<2x1x128xf32, #tpu.memory_space<vmem>>, %arg4: memref<2x1x128xf32, #tpu.memory_space<vmem>>, %arg5: memref<2x1x128xf32, #tpu.memory_space<vmem>>, %arg6: memref<128x8xf32, #tpu.memory_space<vmem>>, %arg7: memref<8x128xf32, #tpu.memory_space<vmem>>, %arg8: memref<16x16x128xbf16, #tpu.memory_space<vmem>>) attributes {dimension_semantics = [#tpu.dimension_semantics<parallel>], iteration_bounds = array<i64: 1>, scalar_prefetch = 0 : i64, scratch_operands = 0 : i64, tpu.core_type = #tpu.core_type<tc>, window_params = [{transform_indices = @transform_0, window_bounds = array<i64: 16, 16, 128>}, {pipeline_mode = #tpu.pipeline_mode<synchronous>, transform_indices = @transform_1, window_bounds = array<i64: 2, 128, 128>}, {pipeline_mode = #tpu.pipeline_mode<synchronous>, transform_indices = @transform_2, window_bounds = array<i64: 2, 1, 128>}, {pipeline_mode = #tpu.pipeline_mode<synchronous>, transform_indices = @transform_3, window_bounds = array<i64: 2, 1, 128>}, {pipeline_mode = #tpu.pipeline_mode<synchronous>, transform_indices = @transform_4, window_bounds = array<i64: 2, 1, 128>}, {pipeline_mode = #tpu.pipeline_mode<synchronous>, transform_indices = @transform_5, window_bounds = array<i64: 128, 8>}, {pipeline_mode = #tpu.pipeline_mode<synchronous>, transform_indices = @transform_6, window_bounds = array<i64: 8, 128>}, {transform_indices = @transform_7, window_bounds = array<i64: 16, 16, 128>}]} {
    %c0 = arith.constant 0 : index
    %c0_0 = arith.constant 0 : index
    %c0_1 = arith.constant 0 : index
    %0 = vector.load %arg1[%c0, %c0_0, %c0_1] : memref<16x16x128xbf16, #tpu.memory_space<vmem>>, vector<16x16x128xbf16>
    %c0_2 = arith.constant 0 : index
    %c0_3 = arith.constant 0 : index
    %1 = vector.load %arg6[%c0_2, %c0_3] : memref<128x8xf32, #tpu.memory_space<vmem>>, vector<128x8xf32>
    %c0_4 = arith.constant 0 : index
    %c0_5 = arith.constant 0 : index
    %2 = vector.load %arg7[%c0_4, %c0_5] : memref<8x128xf32, #tpu.memory_space<vmem>>, vector<8x128xf32>
    %c0_6 = arith.constant 0 : index
    %c0_7 = arith.constant 0 : index
    %c0_8 = arith.constant 0 : index
    %3 = vector.load %arg2[%c0_6, %c0_7, %c0_8] : memref<2x128x128xbf16, #tpu.memory_space<vmem>>, vector<1x128x128xbf16>
    %4 = vector.shape_cast %3 : vector<1x128x128xbf16> to vector<128x128xbf16>
    %c0_9 = arith.constant 0 : index
    %c0_10 = arith.constant 0 : index
    %c0_11 = arith.constant 0 : index
    %5 = vector.load %arg3[%c0_9, %c0_10, %c0_11] : memref<2x1x128xf32, #tpu.memory_space<vmem>>, vector<1x1x128xf32>
    %6 = vector.shape_cast %5 : vector<1x1x128xf32> to vector<1x128xf32>
    %c0_12 = arith.constant 0 : index
    %c0_13 = arith.constant 0 : index
    %c0_14 = arith.constant 0 : index
    %7 = vector.load %arg4[%c0_12, %c0_13, %c0_14] : memref<2x1x128xf32, #tpu.memory_space<vmem>>, vector<1x1x128xf32>
    %8 = vector.shape_cast %7 : vector<1x1x128xf32> to vector<1x128xf32>
    %c0_15 = arith.constant 0 : index
    %c0_16 = arith.constant 0 : index
    %c0_17 = arith.constant 0 : index
    %9 = vector.load %arg5[%c0_15, %c0_16, %c0_17] : memref<2x1x128xf32, #tpu.memory_space<vmem>>, vector<1x1x128xf32>
    %10 = vector.shape_cast %9 : vector<1x1x128xf32> to vector<1x128xf32>
    %11 = vector.shape_cast %0 : vector<16x16x128xbf16> to vector<256x128xbf16>
    %cst = arith.constant dense<0.000000e+00> : vector<256x128xf32>
    %12 = tpu.matmul %11, %4, %cst {dimension_numbers = #tpu.dot_dimension_numbers<[1], [0], [0], [1], [0, 0, 1, 1], [], []>} : vector<256x128xbf16>, vector<128x128xbf16>, vector<256x128xf32> -> vector<256x128xf32>
    %13 = vector.shape_cast %12 : vector<256x128xf32> to vector<16x16x128xf32>
    %cst_18 = arith.constant dense<0.000000e+00> : vector<16x128xf32>
    %14 = vector.multi_reduction <add>, %13, %cst_18 [1] : vector<16x16x128xf32> to vector<16x128xf32>
    %15 = arith.mulf %13, %13 : vector<16x16x128xf32>
    %cst_19 = arith.constant dense<0.000000e+00> : vector<16x128xf32>
    %16 = vector.multi_reduction <add>, %15, %cst_19 [1] : vector<16x16x128xf32> to vector<16x128xf32>
    %cst_20 = arith.constant 1.600000e+01 : f32
    %17 = vector.broadcast %cst_20 : f32 to vector<1x128xf32>
    %18 = arith.mulf %17, %6 : vector<1x128xf32>
    %19 = vector.broadcast %18 : vector<1x128xf32> to vector<16x128xf32>
    %20 = arith.addf %14, %19 : vector<16x128xf32>
    %cst_21 = arith.constant 2.000000e+00 : f32
    %21 = vector.broadcast %cst_21 : f32 to vector<1x128xf32>
    %22 = arith.mulf %21, %6 : vector<1x128xf32>
    %23 = vector.broadcast %22 : vector<1x128xf32> to vector<16x128xf32>
    %24 = arith.mulf %23, %14 : vector<16x128xf32>
    %25 = arith.addf %16, %24 : vector<16x128xf32>
    %26 = arith.mulf %6, %6 : vector<1x128xf32>
    %cst_22 = arith.constant 1.600000e+01 : f32
    %27 = vector.broadcast %cst_22 : f32 to vector<1x128xf32>
    %28 = arith.mulf %27, %26 : vector<1x128xf32>
    %29 = vector.broadcast %28 : vector<1x128xf32> to vector<16x128xf32>
    %30 = arith.addf %25, %29 : vector<16x128xf32>
    %cst_23 = arith.constant dense<0.000000e+00> : vector<16x8xf32>
    %31 = tpu.matmul %20, %1, %cst_23 {dimension_numbers = #tpu.dot_dimension_numbers<[1], [0], [0], [1], [0, 0, 1, 1], [], []>} : vector<16x128xf32>, vector<128x8xf32>, vector<16x8xf32> -> vector<16x8xf32>
    %cst_24 = arith.constant 3.906250e-03 : f32
    %32 = vector.broadcast %cst_24 : f32 to vector<16x8xf32>
    %33 = arith.mulf %31, %32 : vector<16x8xf32>
    %cst_25 = arith.constant dense<0.000000e+00> : vector<16x8xf32>
    %34 = tpu.matmul %30, %1, %cst_25 {dimension_numbers = #tpu.dot_dimension_numbers<[1], [0], [0], [1], [0, 0, 1, 1], [], []>} : vector<16x128xf32>, vector<128x8xf32>, vector<16x8xf32> -> vector<16x8xf32>
    %cst_26 = arith.constant 3.906250e-03 : f32
    %35 = vector.broadcast %cst_26 : f32 to vector<16x8xf32>
    %36 = arith.mulf %34, %35 : vector<16x8xf32>
    %37 = arith.mulf %33, %33 : vector<16x8xf32>
    %38 = arith.subf %36, %37 : vector<16x8xf32>
    %cst_27 = arith.constant 0.000000e+00 : f32
    %39 = vector.broadcast %cst_27 : f32 to vector<16x8xf32>
    %40 = arith.maximumf %38, %39 : vector<16x8xf32>
    %cst_28 = arith.constant 9.99999974E-6 : f32
    %41 = vector.broadcast %cst_28 : f32 to vector<16x8xf32>
    %42 = arith.addf %40, %41 : vector<16x8xf32>
    %43 = math.rsqrt %42 : vector<16x8xf32>
    %cst_29 = arith.constant dense<0.000000e+00> : vector<16x128xf32>
    %44 = tpu.matmul %33, %2, %cst_29 {dimension_numbers = #tpu.dot_dimension_numbers<[1], [0], [0], [1], [0, 0, 1, 1], [], []>} : vector<16x8xf32>, vector<8x128xf32>, vector<16x128xf32> -> vector<16x128xf32>
    %cst_30 = arith.constant dense<0.000000e+00> : vector<16x128xf32>
    %45 = tpu.matmul %43, %2, %cst_30 {dimension_numbers = #tpu.dot_dimension_numbers<[1], [0], [0], [1], [0, 0, 1, 1], [], []>} : vector<16x8xf32>, vector<8x128xf32>, vector<16x128xf32> -> vector<16x128xf32>
    %46 = vector.broadcast %8 : vector<1x128xf32> to vector<16x128xf32>
    %47 = arith.mulf %45, %46 : vector<16x128xf32>
    %48 = vector.broadcast %6 : vector<1x128xf32> to vector<16x128xf32>
    %49 = arith.subf %48, %44 : vector<16x128xf32>
    %50 = arith.mulf %49, %47 : vector<16x128xf32>
    %51 = vector.broadcast %10 : vector<1x128xf32> to vector<16x128xf32>
    %52 = arith.addf %51, %50 : vector<16x128xf32>
    %53 = vector.shape_cast %47 : vector<16x128xf32> to vector<16x1x128xf32>
    %54 = vector.broadcast %53 : vector<16x1x128xf32> to vector<16x16x128xf32>
    %55 = arith.mulf %13, %54 : vector<16x16x128xf32>
    %56 = vector.shape_cast %52 : vector<16x128xf32> to vector<16x1x128xf32>
    %57 = vector.broadcast %56 : vector<16x1x128xf32> to vector<16x16x128xf32>
    %58 = arith.addf %55, %57 : vector<16x16x128xf32>
    %cst_31 = arith.constant 0.000000e+00 : f32
    %59 = vector.broadcast %cst_31 : f32 to vector<16x16x128xf32>
    %60 = arith.cmpf ogt, %58, %59 : vector<16x16x128xf32>
    %cst_32 = arith.constant 1.000000e-01 : f32
    %61 = vector.broadcast %cst_32 : f32 to vector<16x16x128xf32>
    %62 = arith.mulf %61, %58 : vector<16x16x128xf32>
    %63 = arith.select %60, %58, %62 : vector<16x16x128xi1>, vector<16x16x128xf32>
    %64 = arith.truncf %63 : vector<16x16x128xf32> to vector<16x16x128xbf16>
    %c1 = arith.constant 1 : index
    %c0_33 = arith.constant 0 : index
    %c0_34 = arith.constant 0 : index
    %65 = vector.load %arg2[%c1, %c0_33, %c0_34] : memref<2x128x128xbf16, #tpu.memory_space<vmem>>, vector<1x128x128xbf16>
    %66 = vector.shape_cast %65 : vector<1x128x128xbf16> to vector<128x128xbf16>
    %c1_35 = arith.constant 1 : index
    %c0_36 = arith.constant 0 : index
    %c0_37 = arith.constant 0 : index
    %67 = vector.load %arg3[%c1_35, %c0_36, %c0_37] : memref<2x1x128xf32, #tpu.memory_space<vmem>>, vector<1x1x128xf32>
    %68 = vector.shape_cast %67 : vector<1x1x128xf32> to vector<1x128xf32>
    %c1_38 = arith.constant 1 : index
    %c0_39 = arith.constant 0 : index
    %c0_40 = arith.constant 0 : index
    %69 = vector.load %arg4[%c1_38, %c0_39, %c0_40] : memref<2x1x128xf32, #tpu.memory_space<vmem>>, vector<1x1x128xf32>
    %70 = vector.shape_cast %69 : vector<1x1x128xf32> to vector<1x128xf32>
    %c1_41 = arith.constant 1 : index
    %c0_42 = arith.constant 0 : index
    %c0_43 = arith.constant 0 : index
    %71 = vector.load %arg5[%c1_41, %c0_42, %c0_43] : memref<2x1x128xf32, #tpu.memory_space<vmem>>, vector<1x1x128xf32>
    %72 = vector.shape_cast %71 : vector<1x1x128xf32> to vector<1x128xf32>
    %73 = vector.shape_cast %64 : vector<16x16x128xbf16> to vector<256x128xbf16>
    %cst_44 = arith.constant dense<0.000000e+00> : vector<256x128xf32>
    %74 = tpu.matmul %73, %66, %cst_44 {dimension_numbers = #tpu.dot_dimension_numbers<[1], [0], [0], [1], [0, 0, 1, 1], [], []>} : vector<256x128xbf16>, vector<128x128xbf16>, vector<256x128xf32> -> vector<256x128xf32>
    %75 = vector.shape_cast %74 : vector<256x128xf32> to vector<16x16x128xf32>
    %cst_45 = arith.constant dense<0.000000e+00> : vector<16x128xf32>
    %76 = vector.multi_reduction <add>, %75, %cst_45 [1] : vector<16x16x128xf32> to vector<16x128xf32>
    %77 = arith.mulf %75, %75 : vector<16x16x128xf32>
    %cst_46 = arith.constant dense<0.000000e+00> : vector<16x128xf32>
    %78 = vector.multi_reduction <add>, %77, %cst_46 [1] : vector<16x16x128xf32> to vector<16x128xf32>
    %cst_47 = arith.constant 1.600000e+01 : f32
    %79 = vector.broadcast %cst_47 : f32 to vector<1x128xf32>
    %80 = arith.mulf %79, %68 : vector<1x128xf32>
    %81 = vector.broadcast %80 : vector<1x128xf32> to vector<16x128xf32>
    %82 = arith.addf %76, %81 : vector<16x128xf32>
    %cst_48 = arith.constant 2.000000e+00 : f32
    %83 = vector.broadcast %cst_48 : f32 to vector<1x128xf32>
    %84 = arith.mulf %83, %68 : vector<1x128xf32>
    %85 = vector.broadcast %84 : vector<1x128xf32> to vector<16x128xf32>
    %86 = arith.mulf %85, %76 : vector<16x128xf32>
    %87 = arith.addf %78, %86 : vector<16x128xf32>
    %88 = arith.mulf %68, %68 : vector<1x128xf32>
    %cst_49 = arith.constant 1.600000e+01 : f32
    %89 = vector.broadcast %cst_49 : f32 to vector<1x128xf32>
    %90 = arith.mulf %89, %88 : vector<1x128xf32>
    %91 = vector.broadcast %90 : vector<1x128xf32> to vector<16x128xf32>
    %92 = arith.addf %87, %91 : vector<16x128xf32>
    %cst_50 = arith.constant dense<0.000000e+00> : vector<16x8xf32>
    %93 = tpu.matmul %82, %1, %cst_50 {dimension_numbers = #tpu.dot_dimension_numbers<[1], [0], [0], [1], [0, 0, 1, 1], [], []>} : vector<16x128xf32>, vector<128x8xf32>, vector<16x8xf32> -> vector<16x8xf32>
    %cst_51 = arith.constant 3.906250e-03 : f32
    %94 = vector.broadcast %cst_51 : f32 to vector<16x8xf32>
    %95 = arith.mulf %93, %94 : vector<16x8xf32>
    %cst_52 = arith.constant dense<0.000000e+00> : vector<16x8xf32>
    %96 = tpu.matmul %92, %1, %cst_52 {dimension_numbers = #tpu.dot_dimension_numbers<[1], [0], [0], [1], [0, 0, 1, 1], [], []>} : vector<16x128xf32>, vector<128x8xf32>, vector<16x8xf32> -> vector<16x8xf32>
    %cst_53 = arith.constant 3.906250e-03 : f32
    %97 = vector.broadcast %cst_53 : f32 to vector<16x8xf32>
    %98 = arith.mulf %96, %97 : vector<16x8xf32>
    %99 = arith.mulf %95, %95 : vector<16x8xf32>
    %100 = arith.subf %98, %99 : vector<16x8xf32>
    %cst_54 = arith.constant 0.000000e+00 : f32
    %101 = vector.broadcast %cst_54 : f32 to vector<16x8xf32>
    %102 = arith.maximumf %100, %101 : vector<16x8xf32>
    %cst_55 = arith.constant 9.99999974E-6 : f32
    %103 = vector.broadcast %cst_55 : f32 to vector<16x8xf32>
    %104 = arith.addf %102, %103 : vector<16x8xf32>
    %105 = math.rsqrt %104 : vector<16x8xf32>
    %cst_56 = arith.constant dense<0.000000e+00> : vector<16x128xf32>
    %106 = tpu.matmul %95, %2, %cst_56 {dimension_numbers = #tpu.dot_dimension_numbers<[1], [0], [0], [1], [0, 0, 1, 1], [], []>} : vector<16x8xf32>, vector<8x128xf32>, vector<16x128xf32> -> vector<16x128xf32>
    %cst_57 = arith.constant dense<0.000000e+00> : vector<16x128xf32>
    %107 = tpu.matmul %105, %2, %cst_57 {dimension_numbers = #tpu.dot_dimension_numbers<[1], [0], [0], [1], [0, 0, 1, 1], [], []>} : vector<16x8xf32>, vector<8x128xf32>, vector<16x128xf32> -> vector<16x128xf32>
    %108 = vector.broadcast %70 : vector<1x128xf32> to vector<16x128xf32>
    %109 = arith.mulf %107, %108 : vector<16x128xf32>
    %110 = vector.broadcast %68 : vector<1x128xf32> to vector<16x128xf32>
    %111 = arith.subf %110, %106 : vector<16x128xf32>
    %112 = arith.mulf %111, %109 : vector<16x128xf32>
    %113 = vector.broadcast %72 : vector<1x128xf32> to vector<16x128xf32>
    %114 = arith.addf %113, %112 : vector<16x128xf32>
    %115 = vector.shape_cast %109 : vector<16x128xf32> to vector<16x1x128xf32>
    %116 = vector.broadcast %115 : vector<16x1x128xf32> to vector<16x16x128xf32>
    %117 = arith.mulf %75, %116 : vector<16x16x128xf32>
    %118 = vector.shape_cast %114 : vector<16x128xf32> to vector<16x1x128xf32>
    %119 = vector.broadcast %118 : vector<16x1x128xf32> to vector<16x16x128xf32>
    %120 = arith.addf %117, %119 : vector<16x16x128xf32>
    %cst_58 = arith.constant 0.000000e+00 : f32
    %121 = vector.broadcast %cst_58 : f32 to vector<16x16x128xf32>
    %122 = arith.cmpf ogt, %120, %121 : vector<16x16x128xf32>
    %cst_59 = arith.constant 1.000000e-01 : f32
    %123 = vector.broadcast %cst_59 : f32 to vector<16x16x128xf32>
    %124 = arith.mulf %123, %120 : vector<16x16x128xf32>
    %125 = arith.select %122, %120, %124 : vector<16x16x128xi1>, vector<16x16x128xf32>
    %126 = arith.truncf %125 : vector<16x16x128xf32> to vector<16x16x128xbf16>
    %c0_60 = arith.constant 0 : index
    %c0_61 = arith.constant 0 : index
    %c0_62 = arith.constant 0 : index
    %127 = vector.load %arg8[%c0_60, %c0_61, %c0_62] : memref<16x16x128xbf16, #tpu.memory_space<vmem>>, vector<16x16x128xbf16>
    tpu.vector_store %arg8[%c0_60, %c0_61, %c0_62], %126 {strides = array<i32>} : memref<16x16x128xbf16, #tpu.memory_space<vmem>>, vector<16x16x128xbf16>,
    return
  }
  func.func @transform_0(%arg0: i32) -> (i32, i32, i32) {
    %c0_i32 = arith.constant 0 : i32
    %c0_i32_0 = arith.constant 0 : i32
    %c0_i32_1 = arith.constant 0 : i32
    return %arg0, %c0_i32, %c0_i32_0 : i32, i32, i32
  }
  func.func @transform_1(%arg0: i32) -> (i32, i32, i32) {
    %c0_i32 = arith.constant 0 : i32
    %c0_i32_0 = arith.constant 0 : i32
    %c0_i32_1 = arith.constant 0 : i32
    %c0_i32_2 = arith.constant 0 : i32
    return %c0_i32, %c0_i32_0, %c0_i32_1 : i32, i32, i32
  }
  func.func @transform_2(%arg0: i32) -> (i32, i32, i32) {
    %c0_i32 = arith.constant 0 : i32
    %c0_i32_0 = arith.constant 0 : i32
    %c0_i32_1 = arith.constant 0 : i32
    %c0_i32_2 = arith.constant 0 : i32
    return %c0_i32, %c0_i32_0, %c0_i32_1 : i32, i32, i32
  }
  func.func @transform_3(%arg0: i32) -> (i32, i32, i32) {
    %c0_i32 = arith.constant 0 : i32
    %c0_i32_0 = arith.constant 0 : i32
    %c0_i32_1 = arith.constant 0 : i32
    %c0_i32_2 = arith.constant 0 : i32
    return %c0_i32, %c0_i32_0, %c0_i32_1 : i32, i32, i32
  }
  func.func @transform_4(%arg0: i32) -> (i32, i32, i32) {
    %c0_i32 = arith.constant 0 : i32
    %c0_i32_0 = arith.constant 0 : i32
    %c0_i32_1 = arith.constant 0 : i32
    %c0_i32_2 = arith.constant 0 : i32
    return %c0_i32, %c0_i32_0, %c0_i32_1 : i32, i32, i32
  }
  func.func @transform_5(%arg0: i32) -> (i32, i32) {
    %c0_i32 = arith.constant 0 : i32
    %c0_i32_0 = arith.constant 0 : i32
    %c0_i32_1 = arith.constant 0 : i32
    return %c0_i32, %c0_i32_0 : i32, i32
  }
  func.func @transform_6(%arg0: i32) -> (i32, i32) {
    %c0_i32 = arith.constant 0 : i32
    %c0_i32_0 = arith.constant 0 : i32
    %c0_i32_1 = arith.constant 0 : i32
    return %c0_i32, %c0_i32_0 : i32, i32
  }
  func.func @transform_7(%arg0: i32) -> (i32, i32, i32) {
    %c0_i32 = arith.constant 0 : i32
    %c0_i32_0 = arith.constant 0 : i32
    %c0_i32_1 = arith.constant 0 : i32
    return %arg0, %c0_i32, %c0_i32_0 : i32, i32, i32
  }
}

</mosaic_0001>

<bundles_post_ra>
// kernel: mlp_forward.1
= control target key start
LH: loop header
LB: loop body
LE: loop exit
PB: predicated region body
PF: predicated region fallthrough
CT: control target
= control target key end

     0   :  { %v658_v48 = vlaneseq  ;;  %vm702_vm0 = vcmask 1041409   ;;  %vm704_vm1 = vcmask 1042434   ;;  %vm706_vm2 = vcmask 1043459   ;;  %s5734_s1 = inlined_call_operand.vmem [shape: bf16[2,128,128], index: 1, kind: input, shape index: {}]   ;;  %s5735_s0 = inlined_call_operand.vmem [shape: bf16[16,16,128], index: 0, kind: input, shape index: {}]   ;;  %s5736_s5 = inlined_call_operand.vmem [shape: f32[128,8], index: 5, kind: input, shape index: {}]   ;;  %s5737_s2 = inlined_call_operand.vmem [shape: f32[2,1,128], index: 2, kind: input, shape index: {}]   ;;  %s5738_s6 = inlined_call_operand.vmem [shape: f32[8,128], index: 6, kind: input, shape index: {}]   ;;  %s5739_s3 = inlined_call_operand.vmem [shape: f32[2,1,128], index: 3, kind: input, shape index: {}]   ;;  %s5740_s4 = inlined_call_operand.vmem [shape: f32[2,1,128], index: 4, kind: input, shape index: {}]   ;;  %s5741_s7 = inlined_call_operand.vmem [shape: bf16[16,16,128], index: 7, kind: output, shape index: {}]  }
   0x1   :  { %v4271_v0 = vld [vmem:[%s5734_s1] sm:$0xff]   ;;  %v4272_v1 = vld [vmem:[%s5734_s1 + $0x8] sm:$0xff]   ;;  %v4273_v2 = vld [vmem:[%s5734_s1 + $0x10] sm:$0xff]   ;;  %vm708_vm3 = vcmask 1044484   ;;  %vm710_vm4 = vcmask 1045509   ;;  %vm712_vm5 = vcmask 1046534  }
   0x2   :  { %3886 = vmatprep.subr.bf16.mxu0 %v4271_v0  ;;  %v4274_v3 = vld [vmem:[%s5734_s1 + $0x18] sm:$0xff]   ;;  %v4279_v4 = vld [vmem:[%s5735_s0] sm:$0xff]   ;;  %v4276_v6 = vld [vmem:[%s5734_s1 + $0x28] sm:$0xff]   ;;  %v4513_v51 = vshrl.u32 %v658_v48, 7  ;;  %vm714_vm6 = vcmask 1047559   ;;  %vm1055_vm7 = vcmask 64512  }
   0x3   :  { %3887 = vmatpush3.bf16.msra.mxu0 %v4271_v0  ;;  %3902 = vmatprep.mubr.bf16.mxu0 %v4279_v4  ;;  %v4275_v5 = vld [vmem:[%s5734_s1 + $0x20] sm:$0xff]   ;;  %v4277_v7 = vld [vmem:[%s5734_s1 + $0x30] sm:$0xff]   ;;  %v4278_v8 = vld [vmem:[%s5734_s1 + $0x38] sm:$0xff]  }
   0x4   :  { %3888 = vmatprep.subr.bf16.mxu0 %v4272_v1  ;;  %v4280_v9 = vld [vmem:[%s5735_s0 + $0x8] sm:$0xff]   ;;  %v4281_v10 = vld [vmem:[%s5735_s0 + $0x10] sm:$0xff]   ;;  %v4282_v11 = vld [vmem:[%s5735_s0 + $0x18] sm:$0xff]   ;;  %v4530_v60 = vsub.s32 0, %v4513_v51 }
   0x5   :  { %v4283_v12 = vld [vmem:[%s5735_s0 + $0x20] sm:$0xff]   ;;  %v4284_v13 = vld [vmem:[%s5735_s0 + $0x28] sm:$0xff]   ;;  %v4285_v14 = vld [vmem:[%s5735_s0 + $0x30] sm:$0xff]  }
   0x6   :  { %v4286_v15 = vld [vmem:[%s5735_s0 + $0x38] sm:$0xff]   ;;  %v4287_v16 = vld [vmem:[%s5735_s0 + $0x40] sm:$0xff]   ;;  %v4288_v17 = vld [vmem:[%s5735_s0 + $0x48] sm:$0xff]   ;;  %5814 = vst [vmem:[#allocation6_spill] sm:$0xff] %v4530_v60 }
   0x7   :  { %3889 = vmatpush3.bf16.msra.mxu0 %v4272_v1  ;;  %v4289_v18 = vld [vmem:[%s5735_s0 + $0x50] sm:$0xff]   ;;  %v4290_v19 = vld [vmem:[%s5735_s0 + $0x58] sm:$0xff]   ;;  %v4291_v20 = vld [vmem:[%s5735_s0 + $0x60] sm:$0xff]  }
   0x8   :  { %3890 = vmatprep.subr.bf16.mxu0 %v4273_v2  ;;  %v4292_v21 = vld [vmem:[%s5735_s0 + $0x68] sm:$0xff]   ;;  %v4293_v22 = vld [vmem:[%s5735_s0 + $0x70] sm:$0xff]   ;;  %v4294_v23 = vld [vmem:[%s5735_s0 + $0x78] sm:$0xff]  }
   0x9   :  { %v59_v24 = vld [vmem:[%s5736_s5] sm:$0xff]  ;;  %v60_v25 = vld [vmem:[%s5736_s5 + $0x8] sm:$0xff]  ;;  %v61_v27 = vld [vmem:[%s5736_s5 + $0x10] sm:$0xff] }
   0xa   :  { %v4433_v26 = vpack.c.bf16 %v60_v25, %v59_v24  ;;  %v62_v28 = vld [vmem:[%s5736_s5 + $0x18] sm:$0xff]  ;;  %v63_v29 = vld [vmem:[%s5736_s5 + $0x20] sm:$0xff]  ;;  %v64_v31 = vld [vmem:[%s5736_s5 + $0x28] sm:$0xff] }
   0xb   :  { %3891 = vmatpush3.bf16.msra.mxu0 %v4273_v2  ;;  %v4446_v30 = vpack.c.bf16 %v62_v28, %v61_v27  ;;  %v4451_v32 = vpack.c.bf16 %v64_v31, %v63_v29  ;;  %v65_v33 = vld [vmem:[%s5736_s5 + $0x30] sm:$0xff]  ;;  %v66_v34 = vld [vmem:[%s5736_s5 + $0x38] sm:$0xff]  ;;  %v67_v36 = vld [vmem:[%s5736_s5 + $0x40] sm:$0xff] }
   0xc   :  { %3892 = vmatprep.subr.bf16.mxu0 %v4274_v3  ;;  %4143 = vmatprep.subr.bf16.mxu1 %v4433_v26  ;;  %v4462_v35 = vpack.c.bf16 %v66_v34, %v65_v33  ;;  %v68_v37 = vld [vmem:[%s5736_s5 + $0x48] sm:$0xff]  ;;  %v69_v39 = vld [vmem:[%s5736_s5 + $0x50] sm:$0xff]  ;;  %v70_v40 = vld [vmem:[%s5736_s5 + $0x58] sm:$0xff] }
   0xd   :  { %4145 = vmatpush3.bf16.msra.mxu1 %v4433_v26  ;;  %v4472_v38 = vpack.c.bf16 %v68_v37, %v67_v36  ;;  %v4482_v41 = vpack.c.bf16 %v70_v40, %v69_v39  ;;  %v71_v42 = vld [vmem:[%s5736_s5 + $0x60] sm:$0xff]  ;;  %v72_v43 = vld [vmem:[%s5736_s5 + $0x68] sm:$0xff]  ;;  %v73_v45 = vld [vmem:[%s5736_s5 + $0x70] sm:$0xff] }
   0xe   :  { %4147 = vmatprep.subr.bf16.mxu1 %v4446_v30  ;;  %v4492_v44 = vpack.c.bf16 %v72_v43, %v71_v42  ;;  %v74_v46 = vld [vmem:[%s5736_s5 + $0x78] sm:$0xff]  ;;  %v92_v50 = vld [vmem:[%s5737_s2] sm:$0x1] }
   0xf   :  { %3893 = vmatpush3.bf16.msra.mxu0 %v4274_v3  ;;  %v4502_v47 = vpack.c.bf16 %v74_v46, %v73_v45  ;;  %v656_v57 = vmul.f32 16.0, %v92_v50  ;;  %v679_v1 = vmul.f32 2.0, %v92_v50  ;;  %v775_v2 = vmul.f32 %v92_v50, %v92_v50 }
  0x10   :  { %3894 = vmatprep.subr.bf16.mxu0 %v4275_v5 }
  0x11   :  { %4149 = vmatpush3.bf16.msra.mxu1 %v4446_v30 }
  0x12   :  { %4151 = vmatprep.subr.bf16.mxu1 %v4451_v32 }
  0x13   :  { %3895 = vmatpush3.bf16.msra.mxu0 %v4275_v5 }
  0x14   :  { %3896 = vmatprep.subr.bf16.mxu0 %v4276_v6 }
  0x15   :  { %4153 = vmatpush3.bf16.msra.mxu1 %v4451_v32 }
  0x16   :  { %4155 = vmatprep.subr.bf16.mxu1 %v4462_v35 }
  0x17   :  { %3897 = vmatpush3.bf16.msra.mxu0 %v4276_v6 }
  0x18   :  { %3898 = vmatprep.subr.bf16.mxu0 %v4277_v7 }
  0x19   :  { %4157 = vmatpush3.bf16.msra.mxu1 %v4462_v35 }
  0x1a   :  { %4159 = vmatprep.subr.bf16.mxu1 %v4472_v38 }
  0x1b   :  { %3899 = vmatpush3.bf16.msra.mxu0 %v4277_v7  ;;  %v4537_v7 = vrot.slane %v656_v57, %v4530_v60 }
  0x1c   :  { %3900 = vmatprep.subr.bf16.mxu0 %v4278_v8 }
  0x1d   :  { %4161 = vmatpush3.bf16.msra.mxu1 %v4472_v38 }
  0x1e   :  { %4163 = vmatprep.subr.bf16.mxu1 %v4482_v41 }
  0x1f   :  { %3901 = vmatpush3.bf16.msra.mxu0 %v4278_v8 }
  0x21   :  { %4165 = vmatpush3.bf16.msra.mxu1 %v4482_v41 }
  0x22   :  { %3903 = vmatmul.mubr.bf16.vlgmr.msra.gmra.mrb[0].mxu0 %v4280_v9  ;;  %4167 = vmatprep.subr.bf16.mxu1 %v4492_v44 }
  0x23   :  { %3906 = vmatprep.mubr.bf16.mxu0 %v4281_v10 }
  0x25   :  { %4169 = vmatpush3.bf16.msra.mxu1 %v4492_v44 }
  0x26   :  { %4171 = vmatprep.subr.bf16.mxu1 %v4502_v47 }
  0x29   :  { %4173 = vmatpush3.bf16.msra.mxu1 %v4502_v47 }
  0x2a   :  { %3907 = vmatmul.mubr.bf16.gmra.mrb[4].mxu0 %v4282_v11  ;;  %4175 = vmatprep.subr.bf16.mxu1 %v4433_v26 }
  0x2b   :  { %3910 = vmatprep.mubr.bf16.mxu0 %v4283_v12 }
  0x32   :  { %3911 = vmatmul.mubr.bf16.gmra.mrb[8].mxu0 %v4284_v13 }
  0x33   :  { %3914 = vmatprep.mubr.bf16.mxu0 %v4285_v14  ;;  %v4544_v14 = vrot.slane %v679_v1, %v4530_v60 }
  0x3a   :  { %3915 = vmatmul.mubr.bf16.gmra.mrb[12].mxu0 %v4286_v15  ;;  %v776_v15 = vmul.f32 16.0, %v775_v2 }
  0x3b   :  { %3918 = vmatprep.mubr.bf16.mxu0 %v4287_v16 }
  0x3c   :  { %v4569_v1 = vrot.slane %v776_v15, %v4530_v60 }
  0x42   :  { %3919 = vmatmul.mubr.bf16.gmra.mrb[16].mxu0 %v4288_v17 }
  0x43   :  { %3922 = vmatprep.mubr.bf16.mxu0 %v4289_v18 }
  0x4a   :  { %3923 = vmatmul.mubr.bf16.gmra.mrb[20].mxu0 %v4290_v19 }
  0x4b   :  { %3926 = vmatprep.mubr.bf16.mxu0 %v4291_v20 }
  0x52   :  { %3927 = vmatmul.mubr.bf16.gmra.mrb[24].mxu0 %v4292_v21 }
  0x53   :  { %3930 = vmatprep.mubr.bf16.mxu0 %v4293_v22 }
  0x5a   :  { %3931 = vmatmul.mubr.bf16.gmra.mrb[28].mxu0 %v4294_v23 }
  0xf5   :  { %v4508_v49 = vpop.f32.mrb[0].mxu0 }
  0xf6   :  { %5810 = vst [vmem:[#allocation2_spill] sm:$0xff] %v4508_v49  ;;  %v4515_v52 = vpop.f32.mrb[1].mxu0  ;;  %v514_v54 = vmul.f32 %v4508_v49, %v4508_v49 }
  0xf7   :  { %5811 = vst [vmem:[#allocation3_spill] sm:$0xff] %v4515_v52  ;;  %v4517_v53 = vpop.f32.mrb[2].mxu0  ;;  %v512_v59 = vmul.f32 %v4515_v52, %v4515_v52 }
  0xf8   :  { %5812 = vst [vmem:[#allocation4_spill] sm:$0xff] %v4517_v53  ;;  %v407_v55 = vadd.f32 %v4517_v53, %v4508_v49  ;;  %v515_v56 = vmul.f32 %v4517_v53, %v4517_v53  ;;  %v4525_v58 = vpop.f32.mrb[3].mxu0 }
  0xf9   :  { %5813 = vst [vmem:[#allocation5_spill] sm:$0xff] %v4525_v58  ;;  %v400_v61 = vadd.f32 %v4525_v58, %v4515_v52  ;;  %v513_v62 = vmul.f32 %v4525_v58, %v4525_v58 }
  0xfa   :  { %v408_v63 = vrot.slane %v407_v55, 4  ;;  %v551_v0 = vadd.f32 %v515_v56, %v514_v54 }
  0xfb   :  { %v401_v3 = vrot.slane %v400_v61, 4  ;;  %v544_v4 = vadd.f32 %v513_v62, %v512_v59 }
  0xfc   :  { %v409_v5 = vadd.f32 %v408_v63, %v407_v55  ;;  %v552_v6 = vrot.slane %v551_v0, 4 }
  0xfd   :  { %v402_v8 = vadd.f32 %v401_v3, %v400_v61  ;;  %v545_v9 = vrot.slane %v544_v4, 4  ;;  %v4539_v10 = vpop.f32.mrb[4].mxu0 }
  0xfe   :  { %5815 = vst [vmem:[#allocation7_spill] sm:$0xff] %v4539_v10  ;;  %v410_v11 = vrot.slane %v409_v5, 2  ;;  %v553_v12 = vadd.f32 %v552_v6, %v551_v0  ;;  %v4541_v13 = vpop.f32.mrb[5].mxu0  ;;  %v518_v18 = vmul.f32 %v4539_v10, %v4539_v10 }
  0xff   :  { %5816 = vst [vmem:[#allocation8_spill] sm:$0xff] %v4541_v13  ;;  %v403_v16 = vrot.slane %v402_v8, 2  ;;  %v546_v17 = vadd.f32 %v545_v9, %v544_v4  ;;  %v516_v19 = vmul.f32 %v4541_v13, %v4541_v13  ;;  %v4550_v20 = vpop.f32.mrb[6].mxu0 }
 0x100   :  { %5817 = vst [vmem:[#allocation9_spill] sm:$0xff] %v4550_v20  ;;  %v411_v21 = vadd.f32 %v410_v11, %v409_v5  ;;  %v554_v22 = vrot.slane %v553_v12, 2  ;;  %v421_v23 = vadd.f32 %v4550_v20, %v4539_v10  ;;  %v519_v24 = vmul.f32 %v4550_v20, %v4550_v20  ;;  %v4556_v25 = vpop.f32.mrb[7].mxu0 }
 0x101   :  { %5818 = vst [vmem:[#allocation10_spill] sm:$0xff] %v4556_v25  ;;  %v404_v27 = vadd.f32 %v403_v16, %v402_v8  ;;  %v547_v28 = vrot.slane %v546_v17, 2  ;;  %v414_v29 = vadd.f32 %v4556_v25, %v4541_v13  ;;  %v517_v31 = vmul.f32 %v4556_v25, %v4556_v25 }
 0x102   :  { %v412_v33 = vrot.slane %v411_v21, 1  ;;  %v555_v34 = vadd.f32 %v554_v22, %v553_v12  ;;  %v422_v36 = vrot.slane %v421_v23, 4  ;;  %v565_v37 = vadd.f32 %v519_v24, %v518_v18 }
 0x103   :  { %v405_v39 = vrot.slane %v404_v27, 1  ;;  %v548_v40 = vadd.f32 %v547_v28, %v546_v17  ;;  %v415_v42 = vrot.slane %v414_v29, 4  ;;  %v558_v43 = vadd.f32 %v517_v31, %v516_v19 }
 0x104   :  { %v413_v45 = vadd.f32 %v412_v33, %v411_v21  ;;  %v556_v46 = vrot.slane %v555_v34, 1  ;;  %v423_v48 = vadd.f32 %v422_v36, %v421_v23  ;;  %v566_v50 = vrot.slane %v565_v37, 4 }
 0x105   :  { %v406_v54 = vadd.f32 %v405_v39, %v404_v27  ;;  %v549_v55 = vrot.slane %v548_v40, 1  ;;  %v416_v56 = vadd.f32 %v415_v42, %v414_v29  ;;  %v559_v57 = vrot.slane %v558_v43, 4  ;;  %v4562_v59 = vpop.f32.mrb[8].mxu0 }
 0x106   :  { %5819 = vst [vmem:[#allocation11_spill] sm:$0xff] %v4562_v59  ;;  %v4564_v61 = vadd.f32 %v556_v46, %v555_v34  ;;  %v424_v62 = vrot.slane %v423_v48, 2  ;;  %v567_v63 = vadd.f32 %v566_v50, %v565_v37  ;;  %v4566_v0 = vpop.f32.mrb[9].mxu0  ;;  %v4572_v2 = vadd.f32 %v4537_v7, %v413_v45 }
 0x107   :  { %5820 = vst [vmem:[#allocation12_spill] sm:$0xff] %v4566_v0  ;;  %v4574_v3 = vadd.f32 %v549_v55, %v548_v40  ;;  %v703_v4 = vsel %vm702_vm0, %v413_v45, %v406_v54  ;;  %v417_v5 = vrot.slane %v416_v56, 2  ;;  %v4577_v6 = vpop.f32.mrb[10].mxu0  ;;  %v4580_v8 = vadd.f32 %v4537_v7, %v406_v54 }
 0x108   :  { %5821 = vst [vmem:[#allocation13_spill] sm:$0xff] %v4577_v6  ;;  %v425_v9 = vadd.f32 %v424_v62, %v423_v48  ;;  %v568_v11 = vrot.slane %v567_v63, 2  ;;  %v560_v12 = vadd.f32 %v559_v57, %v558_v43  ;;  %v4582_v16 = vpop.f32.mrb[11].mxu0  ;;  %v522_v17 = vmul.f32 %v4562_v59, %v4562_v59 }
 0x109   :  { %5822 = vst [vmem:[#allocation14_spill] sm:$0xff] %v4582_v16  ;;  %v418_v15 = vadd.f32 %v417_v5, %v416_v56  ;;  %v520_v18 = vmul.f32 %v4566_v0, %v4566_v0  ;;  %v435_v19 = vadd.f32 %v4577_v6, %v4562_v59  ;;  %v523_v24 = vmul.f32 %v4577_v6, %v4577_v6 }
 0x10a   :  { %v426_v21 = vrot.slane %v425_v9, 1  ;;  %v569_v22 = vadd.f32 %v568_v11, %v567_v63  ;;  %v561_v23 = vrot.slane %v560_v12, 2  ;;  %v428_v29 = vadd.f32 %v4582_v16, %v4566_v0 }
 0x10b   :  { %v419_v27 = vrot.slane %v418_v15, 1  ;;  %v436_v28 = vrot.slane %v435_v19, 4  ;;  %v521_v31 = vmul.f32 %v4582_v16, %v4582_v16  ;;  %v579_v37 = vadd.f32 %v523_v24, %v522_v17 }
 0x10c   :  { %v427_v33 = vadd.f32 %v426_v21, %v425_v9  ;;  %v570_v34 = vrot.slane %v569_v22, 1  ;;  %v562_v36 = vadd.f32 %v561_v23, %v560_v12  ;;  %v429_v42 = vrot.slane %v428_v29, 4 }
 0x10d   :  { %v420_v39 = vadd.f32 %v419_v27, %v418_v15  ;;  %v437_v40 = vadd.f32 %v436_v28, %v435_v19  ;;  %v572_v43 = vadd.f32 %v521_v31, %v520_v18  ;;  %v4596_v45 = vpop.f32.mrb[12].mxu0  ;;  %v580_v54 = vrot.slane %v579_v37, 4 }
 0x10e   :  { %5823 = vst [vmem:[#allocation15_spill] sm:$0xff] %v4596_v45  ;;  %v4600_v48 = vadd.f32 %v4537_v7, %v427_v33  ;;  %v563_v50 = vrot.slane %v562_v36, 1  ;;  %v4602_v55 = vpop.f32.mrb[13].mxu0  ;;  %v4604_v56 = vadd.f32 %v570_v34, %v569_v22  ;;  %v430_v63 = vadd.f32 %v429_v42, %v428_v29 }
 0x10f   :  { %5824 = vst [vmem:[#allocation16_spill] sm:$0xff] %v4602_v55  ;;  %v705_v57 = vsel %vm704_vm1, %v420_v39, %v703_v4  ;;  %v438_v62 = vrot.slane %v437_v40, 2  ;;  %v4607_v5 = vpop.f32.mrb[14].mxu0  ;;  %v4611_v11 = vadd.f32 %v4537_v7, %v420_v39  ;;  %v581_v12 = vadd.f32 %v580_v54, %v579_v37 }
 0x110   :  { %5825 = vst [vmem:[#allocation17_spill] sm:$0xff] %v4607_v5  ;;  %v573_v15 = vrot.slane %v572_v43, 4  ;;  %v4613_v17 = vpop.f32.mrb[15].mxu0  ;;  %v4615_v18 = vadd.f32 %v563_v50, %v562_v36  ;;  %v431_v21 = vrot.slane %v430_v63, 2  ;;  %v707_v22 = vsel %vm706_vm2, %v427_v33, %v705_v57 }
 0x111   :  { %5826 = vst [vmem:[#allocation18_spill] sm:$0xff] %v4613_v17  ;;  %v439_v19 = vadd.f32 %v438_v62, %v437_v40  ;;  %v582_v4 = vrot.slane %v581_v12, 2  ;;  %v526_v24 = vmul.f32 %v4596_v45, %v4596_v45  ;;  %v524_v27 = vmul.f32 %v4602_v55, %v4602_v55 }
 0x112   :  { %v574_v23 = vadd.f32 %v573_v15, %v572_v43  ;;  %v432_v29 = vadd.f32 %v431_v21, %v430_v63  ;;  %v449_v31 = vadd.f32 %v4607_v5, %v4596_v45  ;;  %v527_v34 = vmul.f32 %v4607_v5, %v4607_v5 }
 0x113   :  { %v440_v28 = vrot.slane %v439_v19, 1  ;;  %v583_v36 = vadd.f32 %v582_v4, %v581_v12  ;;  %v442_v33 = vadd.f32 %v4613_v17, %v4602_v55  ;;  %v525_v39 = vmul.f32 %v4613_v17, %v4613_v17 }
 0x114   :  { %v575_v37 = vrot.slane %v574_v23, 2  ;;  %v433_v42 = vrot.slane %v432_v29, 1  ;;  %v450_v43 = vrot.slane %v449_v31, 4  ;;  %v593_v50 = vadd.f32 %v527_v34, %v526_v24 }
 0x115   :  { %v4631_v54 = vpop.f32.mrb[16].mxu0  ;;  %v584_v57 = vrot.slane %v583_v36, 1  ;;  %v443_v63 = vrot.slane %v442_v33, 4  ;;  %v586_v15 = vadd.f32 %v525_v39, %v524_v27  ;;  %v4635_v12 = vadd.f32 %v440_v28, %v439_v19 }
 0x116   :  { %5827 = vst [vmem:[#allocation19_spill] sm:$0xff] %v4631_v54  ;;  %v576_v62 = vadd.f32 %v575_v37, %v574_v23  ;;  %v4633_v21 = vpop.f32.mrb[17].mxu0  ;;  %v4637_v4 = vadd.f32 %v433_v42, %v432_v29  ;;  %v451_v9 = vadd.f32 %v450_v43, %v449_v31  ;;  %v594_v46 = vrot.slane %v593_v50, 4 }
 0x117   :  { %5828 = vst [vmem:[#allocation20_spill] sm:$0xff] %v4633_v21  ;;  %v4639_v5 = vpop.f32.mrb[18].mxu0  ;;  %v4641_v40 = vadd.f32 %v584_v57, %v583_v36  ;;  %v444_v45 = vadd.f32 %v443_v63, %v442_v33  ;;  %v587_v24 = vrot.slane %v586_v15, 4  ;;  %v530_v34 = vmul.f32 %v4631_v54, %v4631_v54 }
 0x118   :  { %5829 = vst [vmem:[#allocation21_spill] sm:$0xff] %v4639_v5  ;;  %v4645_v23 = vpop.f32.mrb[19].mxu0  ;;  %v577_v27 = vrot.slane %v576_v62, 1  ;;  %v4649_v19 = vsel %vm708_vm3, %v4637_v4, %v707_v22  ;;  %v452_v28 = vrot.slane %v451_v9, 2  ;;  %v595_v29 = vadd.f32 %v594_v46, %v593_v50 }
 0x119   :  { %5830 = vst [vmem:[#allocation22_spill] sm:$0xff] %v4645_v23  ;;  %v445_v31 = vrot.slane %v444_v45, 2  ;;  %v588_v37 = vadd.f32 %v587_v24, %v586_v15  ;;  %v528_v36 = vmul.f32 %v4633_v21, %v4633_v21  ;;  %v463_v33 = vadd.f32 %v4639_v5, %v4631_v54 }
 0x11a   :  { %v4655_v39 = vadd.f32 %v452_v28, %v451_v9  ;;  %v596_v42 = vrot.slane %v595_v29, 2  ;;  %v531_v43 = vmul.f32 %v4639_v5, %v4639_v5  ;;  %v456_v22 = vadd.f32 %v4645_v23, %v4633_v21 }
 0x11b   :  { %v4661_v57 = vadd.f32 %v445_v31, %v444_v45  ;;  %v589_v46 = vrot.slane %v588_v37, 2  ;;  %v464_v50 = vrot.slane %v463_v33, 4  ;;  %v529_v63 = vmul.f32 %v4645_v23, %v4645_v23 }
 0x11c   :  { %v4665_v15 = vadd.f32 %v577_v27, %v576_v62  ;;  %v4667_v24 = vadd.f32 %v596_v42, %v595_v29  ;;  %v607_v9 = vadd.f32 %v531_v43, %v530_v34  ;;  %v457_v28 = vrot.slane %v456_v22, 4 }
 0x11d   :  { %v4669_v54 = vpop.f32.mrb[20].mxu0  ;;  %v590_v17 = vadd.f32 %v589_v46, %v588_v37  ;;  %v465_v5 = vadd.f32 %v464_v50, %v463_v33  ;;  %v600_v55 = vadd.f32 %v529_v63, %v528_v36  ;;  %v447_v59 = vrot.slane %v4661_v57, 1 }
 0x11e   :  { %5831 = vst [vmem:[#allocation23_spill] sm:$0xff] %v4669_v54  ;;  %v4671_v6 = vpop.f32.mrb[21].mxu0  ;;  %v608_v16 = vrot.slane %v607_v9, 4  ;;  %v458_v62 = vadd.f32 %v457_v28, %v456_v22  ;;  %v534_v37 = vmul.f32 %v4669_v54, %v4669_v54 }
 0x11f   :  { %5832 = vst [vmem:[#allocation24_spill] sm:$0xff] %v4671_v6  ;;  %v4676_v27 = vpop.f32.mrb[22].mxu0  ;;  %v591_v29 = vrot.slane %v590_v17, 1  ;;  %v466_v34 = vrot.slane %v465_v5, 2  ;;  %v601_v42 = vrot.slane %v600_v55, 4  ;;  %v532_v28 = vmul.f32 %v4671_v6, %v4671_v6 }
 0x120   :  { %5833 = vst [vmem:[#allocation25_spill] sm:$0xff] %v4676_v27  ;;  %v4680_v33 = vpop.f32.mrb[23].mxu0  ;;  %v609_v36 = vadd.f32 %v608_v16, %v607_v9  ;;  %v459_v43 = vrot.slane %v458_v62, 2  ;;  %v477_v46 = vadd.f32 %v4676_v27, %v4669_v54  ;;  %v535_v50 = vmul.f32 %v4676_v27, %v4676_v27 }
 0x121   :  { %5834 = vst [vmem:[#allocation26_spill] sm:$0xff] %v4680_v33  ;;  %v467_v63 = vadd.f32 %v466_v34, %v465_v5  ;;  %v602_v22 = vadd.f32 %v601_v42, %v600_v55  ;;  %v470_v31 = vadd.f32 %v4680_v33, %v4671_v6  ;;  %v533_v54 = vmul.f32 %v4680_v33, %v4680_v33 }
 0x122   :  { %v610_v45 = vrot.slane %v609_v36, 2  ;;  %v460_v0 = vadd.f32 %v459_v43, %v458_v62  ;;  %v478_v20 = vrot.slane %v477_v46, 4  ;;  %v621_v10 = vadd.f32 %v535_v50, %v534_v37 }
 0x123   :  { %v468_v16 = vrot.slane %v467_v63, 1  ;;  %v603_v9 = vrot.slane %v602_v22, 2  ;;  %v471_v25 = vrot.slane %v470_v31, 4  ;;  %v614_v43 = vadd.f32 %v533_v54, %v532_v28 }
 0x124   :  { %v611_v5 = vadd.f32 %v610_v45, %v609_v36  ;;  %v461_v55 = vrot.slane %v460_v0, 1  ;;  %v479_v34 = vadd.f32 %v478_v20, %v477_v46  ;;  %v622_v42 = vrot.slane %v621_v10, 4 }
 0x125   :  { %v4692_v27 = vpop.f32.mrb[24].mxu0  ;;  %v469_v6 = vadd.f32 %v468_v16, %v467_v63  ;;  %v604_v13 = vadd.f32 %v603_v9, %v602_v22  ;;  %v472_v62 = vadd.f32 %v471_v25, %v470_v31  ;;  %v615_v46 = vrot.slane %v614_v43, 4 }
 0x126   :  { %5835 = vst [vmem:[#allocation27_spill] sm:$0xff] %v4692_v27  ;;  %v4694_v37 = vpop.f32.mrb[25].mxu0  ;;  %v612_v50 = vrot.slane %v611_v5, 1  ;;  %v462_v53 = vadd.f32 %v461_v55, %v460_v0  ;;  %v480_v49 = vrot.slane %v479_v34, 2  ;;  %v623_v58 = vadd.f32 %v622_v42, %v621_v10 }
 0x127   :  { %5836 = vst [vmem:[#allocation28_spill] sm:$0xff] %v4694_v37  ;;  %v4696_v52 = vpop.f32.mrb[26].mxu0  ;;  %v4699_v45 = vadd.f32 %v4537_v7, %v469_v6  ;;  %v605_v20 = vrot.slane %v604_v13, 1  ;;  %v473_v36 = vrot.slane %v472_v62, 2  ;;  %v4703_v63 = vadd.f32 %v591_v29, %v590_v17 }
 0x128   :  { %5837 = vst [vmem:[#allocation29_spill] sm:$0xff] %v4696_v52  ;;  %v4701_v33 = vpop.f32.mrb[27].mxu0  ;;  %v4705_v25 = vadd.f32 %v612_v50, %v611_v5  ;;  %v716_v54 = vsel %vm702_vm0, %v469_v6, %v462_v53  ;;  %v481_v31 = vadd.f32 %v480_v49, %v479_v34  ;;  %v4710_v10 = vadd.f32 %v4537_v7, %v462_v53 }
 0x129   :  { %5838 = vst [vmem:[#allocation30_spill] sm:$0xff] %v4701_v33  ;;  %v624_v22 = vrot.slane %v623_v58, 2  ;;  %v474_v28 = vadd.f32 %v473_v36, %v472_v62  ;;  %v4712_v16 = vadd.f32 %v605_v20, %v604_v13  ;;  %v616_v55 = vadd.f32 %v615_v46, %v614_v43 }
 0x12a   :  { %v482_v9 = vrot.slane %v481_v31, 1  ;;  %v448_v42 = vadd.f32 %v447_v59, %v4661_v57  ;;  %v5839_v5 = vrot.slane %v4655_v39, 1  ;;  %v667_v49 = vadd.f32 %v4537_v7, %v4637_v4 }
 0x12b   :  { %v625_v17 = vadd.f32 %v624_v22, %v623_v58  ;;  %v475_v29 = vrot.slane %v474_v28, 1  ;;  %v617_v53 = vrot.slane %v616_v55, 2  ;;  %v668_v62 = vadd.f32 %v4537_v7, %v4635_v12 }
 0x12c   :  { %v455_v6 = vadd.f32 %v5839_v5, %v4655_v39  ;;  %v483_v34 = vadd.f32 %v482_v9, %v481_v31  ;;  %v669_v13 = vadd.f32 %v4537_v7, %v448_v42  ;;  %v711_v39 = vsel %vm710_vm4, %v4635_v12, %v4649_v19 }
 0x12d   :  { %v4723_v50 = vpop.f32.mrb[28].mxu0  ;;  %v626_v43 = vrot.slane %v625_v17, 1  ;;  %v476_v59 = vadd.f32 %v475_v29, %v474_v28  ;;  %v4734_v20 = vadd.f32 %v617_v53, %v616_v55  ;;  %v713_v36 = vsel %vm712_vm5, %v448_v42, %v711_v39 }
 0x12e   :  { %5840 = vst [vmem:[#allocation31_spill] sm:$0xff] %v4723_v50  ;;  %v670_v58 = vadd.f32 %v4537_v7, %v455_v6  ;;  %v4729_v57 = vpop.f32.mrb[29].mxu0  ;;  %v4732_v4 = vadd.f32 %v4537_v7, %v483_v34  ;;  %v5842_v46 = vrot.slane %v4572_v2, 7  ;;  %v538_v19 = vmul.f32 %v4692_v27, %v4692_v27 }
 0x12f   :  { %5841 = vst [vmem:[#allocation32_spill] sm:$0xff] %v4729_v57  ;;  %v4741_v22 = vpop.f32.mrb[30].mxu0  ;;  %v4744_v28 = vadd.f32 %v4537_v7, %v476_v59  ;;  %v717_v12 = vsel %vm704_vm1, %v476_v59, %v716_v54  ;;  %v715_v9 = vsel %vm714_vm6, %v455_v6, %v713_v36  ;;  %v4752_v42 = vadd.f32 %v626_v43, %v625_v17 }
 0x130   :  { %v816_v31 = vsel %vm702_vm0, %v5842_v46, %v4580_v8  ;;  %5843 = vst [vmem:[#allocation33_spill] sm:$0xff] %v4741_v22  ;;  %v4750_v55 = vpop.f32.mrb[31].mxu0  ;;  %v5845_v29 = vrot.slane %v4611_v11, 6  ;;  %v4761_v54 = vmul.f32 %v715_v9, %v4544_v14  ;;  %v5846_v59 = vrot.slane %v4600_v48, 5 }
 0x131   :  { %5844 = vst [vmem:[#allocation34_spill] sm:$0xff] %v4750_v55  ;;  %v821_v39 = vrot.slane %v667_v49, 4  ;;  %v823_v17 = vrot.slane %v668_v62, 3  ;;  %v825_v43 = vrot.slane %v669_v13, 2  ;;  %v827_v36 = vrot.slane %v670_v58, 1 }
 0x132   :  { %v818_v5 = vsel %vm704_vm1, %v5845_v29, %v816_v31  ;;  %v536_v46 = vmul.f32 %v4694_v37, %v4694_v37  ;;  %v491_v31 = vadd.f32 %v4696_v52, %v4692_v27  ;;  %v539_v9 = vmul.f32 %v4696_v52, %v4696_v52 }
 0x133   :  { %v820_v6 = vsel %vm706_vm2, %v5846_v59, %v818_v5  ;;  %v484_v48 = vadd.f32 %v4701_v33, %v4694_v37  ;;  %v537_v49 = vmul.f32 %v4701_v33, %v4701_v33  ;;  %v718_v62 = vsel %vm706_vm2, %v483_v34, %v717_v12 }
 0x134   :  { %v822_v11 = vsel %vm708_vm3, %v821_v39, %v820_v6  ;;  %v542_v13 = vmul.f32 %v4723_v50, %v4723_v50  ;;  %v492_v5 = vrot.slane %v491_v31, 4  ;;  %v635_v59 = vadd.f32 %v539_v9, %v538_v19 }
 0x135   :  { %v824_v29 = vsel %vm710_vm4, %v823_v17, %v822_v11  ;;  %v485_v6 = vrot.slane %v484_v48, 4  ;;  %v628_v2 = vadd.f32 %v537_v49, %v536_v46  ;;  %v540_v53 = vmul.f32 %v4729_v57, %v4729_v57 }
 0x136   :  { %v826_v58 = vsel %vm712_vm5, %v825_v43, %v824_v29  ;;  %v505_v17 = vadd.f32 %v4741_v22, %v4723_v50  ;;  %v493_v11 = vadd.f32 %v492_v5, %v491_v31  ;;  %v636_v34 = vrot.slane %v635_v59, 4 }
 0x137   :  { %v828_v39 = vsel %vm714_vm6, %v827_v36, %v826_v58  ;;  %v486_v12 = vadd.f32 %v485_v6, %v484_v48  ;;  %v543_v0 = vmul.f32 %v4741_v22, %v4741_v22  ;;  %v629_v43 = vrot.slane %v628_v2, 4 }
 0x138   :  { %3966 = vmatprep.mubr.f32.mxu1 %v828_v39  ;;  %v506_v29 = vrot.slane %v505_v17, 4  ;;  %v498_v19 = vadd.f32 %v4750_v55, %v4729_v57  ;;  %v541_v36 = vmul.f32 %v4750_v55, %v4750_v55  ;;  %v494_v46 = vrot.slane %v493_v11, 2 }
 0x139   :  { %v637_v9 = vadd.f32 %v636_v34, %v635_v59  ;;  %v487_v49 = vrot.slane %v486_v12, 2  ;;  %v649_v58 = vadd.f32 %v543_v0, %v542_v13  ;;  %v630_v8 = vadd.f32 %v629_v43, %v628_v2 }
 0x13a   :  { %v507_v39 = vadd.f32 %v506_v29, %v505_v17  ;;  %v499_v31 = vrot.slane %v498_v19, 4  ;;  %v642_v5 = vadd.f32 %v541_v36, %v540_v53  ;;  %v495_v48 = vadd.f32 %v494_v46, %v493_v11 }
 0x13b   :  { %v638_v6 = vrot.slane %v637_v9, 2  ;;  %v488_v50 = vadd.f32 %v487_v49, %v486_v12  ;;  %v650_v22 = vrot.slane %v649_v58, 4  ;;  %v631_v52 = vrot.slane %v630_v8, 2 }
 0x13c   :  { %v508_v27 = vrot.slane %v507_v39, 2  ;;  %v500_v33 = vadd.f32 %v499_v31, %v498_v19  ;;  %v643_v37 = vrot.slane %v642_v5, 4  ;;  %v496_v57 = vrot.slane %v495_v48, 1 }
 0x13d   :  { %v639_v23 = vadd.f32 %v638_v6, %v637_v9  ;;  %v489_v21 = vrot.slane %v488_v50, 1  ;;  %v651_v55 = vadd.f32 %v650_v22, %v649_v58  ;;  %v632_v60 = vadd.f32 %v631_v52, %v630_v8 }
 0x13e   :  { %v509_v59 = vadd.f32 %v508_v27, %v507_v39  ;;  %v501_v34 = vrot.slane %v500_v33, 2  ;;  %v644_v0 = vadd.f32 %v643_v37, %v642_v5  ;;  %v497_v2 = vadd.f32 %v496_v57, %v495_v48 }
 0x13f   :  { %v640_v13 = vrot.slane %v639_v23, 1  ;;  %v490_v17 = vadd.f32 %v489_v21, %v488_v50  ;;  %v652_v53 = vrot.slane %v651_v55, 2  ;;  %v633_v11 = vrot.slane %v632_v60, 1 }
 0x140   :  { %v510_v43 = vrot.slane %v509_v59, 1  ;;  %v502_v12 = vadd.f32 %v501_v34, %v500_v33  ;;  %v645_v29 = vrot.slane %v644_v0, 2  ;;  %v5847_v19 = vrot.slane %v4734_v20, 1 }
 0x141   :  { %v675_v46 = vadd.f32 %v4537_v7, %v490_v17  ;;  %v719_v52 = vsel %vm708_vm3, %v490_v17, %v718_v62  ;;  %v653_v27 = vadd.f32 %v652_v53, %v651_v55  ;;  %v4800_v22 = vadd.f32 %v640_v13, %v639_v23 }
 0x142   :  { %v4796_v36 = vadd.f32 %v5847_v19, %v4734_v20  ;;  %v503_v37 = vrot.slane %v502_v12, 1  ;;  %v646_v57 = vadd.f32 %v645_v29, %v644_v0  ;;  %v720_v21 = vsel %vm710_vm4, %v497_v2, %v719_v52 }
 0x143   :  { %v835_v50 = vrot.slane %v675_v46, 4  ;;  %v654_v8 = vrot.slane %v653_v27, 1  ;;  %v511_v33 = vadd.f32 %v510_v43, %v509_v59  ;;  %v676_v9 = vadd.f32 %v4537_v7, %v497_v2 }
 0x144   :  { %v4804_v49 = vadd.f32 %v633_v11, %v632_v60  ;;  %v504_v20 = vadd.f32 %v503_v37, %v502_v12  ;;  %v647_v58 = vrot.slane %v646_v57, 1  ;;  %v5848_v39 = vrot.slane %v4699_v45, 7 }
 0x145   :  { %v4810_v23 = vadd.f32 %v654_v8, %v653_v27  ;;  %v678_v62 = vadd.f32 %v4537_v7, %v511_v33  ;;  %v5849_v31 = vrot.slane %v4744_v28, 6  ;;  %v5850_v48 = vrot.slane %v4667_v24, 1 }
 0x146   :  { %v830_v55 = vsel %vm702_vm0, %v5848_v39, %v4710_v10  ;;  %v721_v6 = vsel %vm712_vm5, %v504_v20, %v720_v21  ;;  %v677_v59 = vadd.f32 %v4537_v7, %v504_v20  ;;  %v5851_v45 = vrot.slane %v4732_v4, 5 }
 0x147   :  { %v832_v5 = vsel %vm704_vm1, %v5849_v31, %v830_v55  ;;  %v599_v60 = vadd.f32 %v5850_v48, %v4667_v24  ;;  %v837_v34 = vrot.slane %v676_v9, 3  ;;  %v722_v0 = vsel %vm714_vm6, %v511_v33, %v721_v6 }
 0x148   :  { %v834_v10 = vsel %vm706_vm2, %v5851_v45, %v832_v5  ;;  %v841_v28 = vrot.slane %v678_v62, 1  ;;  %v729_v13 = vrot.slane %v4761_v54, 1  ;;  %v726_v17 = vmul.f32 %v722_v0, %v4544_v14 }
 0x149   :  { %v836_v2 = vsel %vm708_vm3, %v835_v50, %v834_v10  ;;  %v839_v53 = vrot.slane %v677_v59, 2  ;;  %v730_v11 = vrot.slane %v4761_v54, 2  ;;  %v731_v7 = vrot.slane %v4761_v54, 3 }
 0x14a   :  { %v838_v24 = vsel %vm710_vm4, %v837_v34, %v836_v2  ;;  %v732_v4 = vrot.slane %v4761_v54, 4  ;;  %v733_v43 = vrot.slane %v4761_v54, 5  ;;  %v734_v12 = vrot.slane %v4761_v54, 6 }
 0x14b   :  { %v840_v29 = vsel %vm712_vm5, %v839_v53, %v838_v24  ;;  %v735_v19 = vrot.slane %v4761_v54, 7  ;;  %v759_v14 = vadd.f32 %v4761_v54, %v4574_v3  ;;  %v760_v46 = vadd.f32 %v729_v13, %v4564_v61 }
 0x14c   :  { %v842_v52 = vsel %vm714_vm6, %v841_v28, %v840_v29  ;;  %v761_v27 = vadd.f32 %v730_v11, %v4615_v18  ;;  %v762_v37 = vadd.f32 %v731_v7, %v4604_v56  ;;  %v763_v21 = vadd.f32 %v732_v4, %v4665_v15 }
 0x14d   :  { %v648_v50 = vadd.f32 %v647_v58, %v646_v57  ;;  %3967 = vmatmul.mubr.f32.vlgmr.msra.gmra.mrb[0].mxu1 %v842_v52  ;;  %v764_v8 = vadd.f32 %v733_v43, %v4641_v40  ;;  %v765_v33 = vadd.f32 %v734_v12, %v4703_v63  ;;  %v766_v9 = vadd.f32 %v735_v19, %v599_v60 }
 0x14e   :  { %4177 = vmatpush3.bf16.msra.mxu1 %v4433_v26  ;;  %v784_v3 = vadd.f32 %v4569_v1, %v760_v46  ;;  %v785_v61 = vadd.f32 %v4569_v1, %v761_v27  ;;  %v786_v54 = vadd.f32 %v4569_v1, %v762_v37  ;;  %v787_v18 = vadd.f32 %v4569_v1, %v763_v21 }
 0x14f   :  { %v783_v56 = vadd.f32 %v4569_v1, %v759_v14  ;;  %v788_v15 = vadd.f32 %v4569_v1, %v764_v8  ;;  %v789_v57 = vadd.f32 %v4569_v1, %v765_v33  ;;  %v790_v40 = vadd.f32 %v4569_v1, %v766_v9  ;;  %4179 = vmatprep.subr.bf16.mxu1 %v4446_v30 }
 0x150   :  { %v938_v63 = vrot.slane %v784_v3, 7  ;;  %v940_v20 = vrot.slane %v785_v61, 6  ;;  %v942_v58 = vrot.slane %v786_v54, 5  ;;  %v736_v39 = vrot.slane %v726_v17, 1 }
 0x151   :  { %v944_v55 = vrot.slane %v787_v18, 4  ;;  %v946_v62 = vrot.slane %v788_v15, 3  ;;  %v948_v31 = vrot.slane %v789_v57, 2  ;;  %v737_v5 = vrot.slane %v726_v17, 2 }
 0x152   :  { %v939_v48 = vsel %vm702_vm0, %v938_v63, %v783_v56  ;;  %4181 = vmatpush3.bf16.msra.mxu1 %v4446_v30  ;;  %v738_v60 = vrot.slane %v726_v17, 3  ;;  %v739_v6 = vrot.slane %v726_v17, 4  ;;  %v740_v59 = vrot.slane %v726_v17, 5  ;;  %v75_v56 = vld [vmem:[%s5738_s6] sm:$0xff] }
 0x153   :  { %v941_v45 = vsel %vm704_vm1, %v940_v20, %v939_v48  ;;  %4183 = vmatprep.subr.bf16.mxu1 %v4451_v32  ;;  %v741_v10 = vrot.slane %v726_v17, 6  ;;  %v742_v34 = vrot.slane %v726_v17, 7  ;;  %v767_v0 = vadd.f32 %v726_v17, %v4712_v16 }
 0x154   :  { %v943_v2 = vsel %vm706_vm2, %v942_v58, %v941_v45  ;;  %v768_v28 = vadd.f32 %v736_v39, %v4705_v25  ;;  %v769_v13 = vadd.f32 %v737_v5, %v4796_v36  ;;  %v770_v24 = vadd.f32 %v738_v60, %v4752_v42 }
 0x155   :  { %v945_v53 = vsel %vm708_vm3, %v944_v55, %v943_v2  ;;  %v771_v11 = vadd.f32 %v739_v6, %v4804_v49  ;;  %v772_v7 = vadd.f32 %v740_v59, %v4800_v22  ;;  %v773_v4 = vadd.f32 %v741_v10, %v648_v50  ;;  %v4296_v2 = vld [vmem:[%s5734_s1 + $0x48] sm:$0xff]  }
 0x156   :  { %v947_v43 = vsel %vm710_vm4, %v946_v62, %v945_v53  ;;  %v950_v12 = vrot.slane %v790_v40, 1  ;;  %4185 = vmatpush3.bf16.msra.mxu1 %v4451_v32  ;;  %v774_v16 = vadd.f32 %v742_v34, %v4810_v23  ;;  %v792_v25 = vadd.f32 %v4569_v1, %v768_v28  ;;  %v4297_v28 = vld [vmem:[%s5734_s1 + $0x50] sm:$0xff]   ;;  %v4300_v53 = vld [vmem:[%s5734_s1 + $0x68] sm:$0xff]  }
 0x157   :  { %v949_v36 = vsel %vm712_vm5, %v948_v31, %v947_v43  ;;  %4187 = vmatprep.subr.bf16.mxu1 %v4462_v35  ;;  %v793_v42 = vadd.f32 %v4569_v1, %v769_v13  ;;  %v794_v49 = vadd.f32 %v4569_v1, %v770_v24  ;;  %v795_v17 = vadd.f32 %v4569_v1, %v771_v11  ;;  %v4298_v13 = vld [vmem:[%s5734_s1 + $0x58] sm:$0xff]   ;;  %v4299_v24 = vld [vmem:[%s5734_s1 + $0x60] sm:$0xff]   ;;  %v4301_v11 = vld [vmem:[%s5734_s1 + $0x70] sm:$0xff]  }
 0x158   :  { %v951_v22 = vsel %vm714_vm6, %v950_v12, %v949_v36  ;;  %v791_v29 = vadd.f32 %v4569_v1, %v767_v0  ;;  %v796_v19 = vadd.f32 %v4569_v1, %v772_v7  ;;  %v952_v23 = vrot.slane %v792_v25, 7  ;;  %v4295_v0 = vld [vmem:[%s5734_s1 + $0x40] sm:$0xff]   ;;  %v4302_v7 = vld [vmem:[%s5734_s1 + $0x78] sm:$0xff]  }
 0x159   :  { %4001 = vmatprep.mubr.f32.mxu1 %v951_v22  ;;  %v954_v14 = vrot.slane %v793_v42, 6  ;;  %v797_v46 = vadd.f32 %v4569_v1, %v773_v4  ;;  %v798_v52 = vadd.f32 %v4569_v1, %v774_v16  ;;  %v956_v37 = vrot.slane %v794_v49, 5  ;;  %4014 = vmatprep.subr.bf16.mxu0 %v4295_v0  ;;  %v4313_v36 = vld [vmem:[%s5737_s2] ss:$0 sm:$0xff] }
 0x15a   :  { %4189 = vmatpush3.bf16.msra.mxu1 %v4462_v35  ;;  %v953_v27 = vsel %vm702_vm0, %v952_v23, %v791_v29  ;;  %v958_v50 = vrot.slane %v795_v17, 4  ;;  %v960_v33 = vrot.slane %v796_v19, 3  ;;  %4015 = vmatpush3.bf16.msra.mxu0 %v4295_v0  ;;  %v4314_v12 = vmov 1966171168   ;;  %v3560_v42 = vld [vmem:[%s5739_s3] ss:$0 sm:$0xff] }
 0x15b   :  { %4191 = vmatprep.subr.bf16.mxu1 %v4472_v38  ;;  %v955_v21 = vsel %vm704_vm1, %v954_v14, %v953_v27  ;;  %v962_v3 = vrot.slane %v797_v46, 2  ;;  %v964_v54 = vrot.slane %v798_v52, 1  ;;  %4016 = vmatprep.subr.bf16.mxu0 %v4296_v2  ;;  %v1248_v16 = vunpack.c.l.s4 %v4314_v12  ;;  %v3561_v14 = vld [vmem:[%s5740_s4] ss:$0 sm:$0xff] }
 0x15c   :  { %v957_v8 = vsel %vm706_vm2, %v956_v37, %v955_v21 }
 0x15d   :  { %v959_v9 = vsel %vm708_vm3, %v958_v50, %v957_v8  ;;  %v1249_v25 = vunpack.c.0.s8 %v1248_v16 }
 0x15e   :  { %4193 = vmatpush3.bf16.msra.mxu1 %v4472_v38  ;;  %v961_v61 = vsel %vm710_vm4, %v960_v33, %v959_v9  ;;  %4017 = vmatpush3.bf16.msra.mxu0 %v4296_v2 }
 0x15f   :  { %4195 = vmatprep.subr.bf16.mxu1 %v4482_v41  ;;  %v963_v1 = vsel %vm712_vm5, %v962_v3, %v961_v61  ;;  %4018 = vmatprep.subr.bf16.mxu0 %v4297_v28  ;;  %v4952_v49 = vsub.s32 %v1249_v25, %v4513_v51 }
 0x160   :  { %v965_v18 = vsel %vm714_vm6, %v964_v54, %v963_v1 }
 0x161   :  { %5852 = vst [vmem:[#allocation35_spill] sm:$0xff] %v4952_v49 }
 0x162   :  { %4197 = vmatpush3.bf16.msra.mxu1 %v4482_v41  ;;  %4019 = vmatpush3.bf16.msra.mxu0 %v4297_v28 }
 0x163   :  { %4199 = vmatprep.subr.bf16.mxu1 %v4492_v44  ;;  %4020 = vmatprep.subr.bf16.mxu0 %v4298_v13 }
 0x166   :  { %4201 = vmatpush3.bf16.msra.mxu1 %v4492_v44  ;;  %4021 = vmatpush3.bf16.msra.mxu0 %v4298_v13 }
 0x167   :  { %4203 = vmatprep.subr.bf16.mxu1 %v4502_v47  ;;  %4022 = vmatprep.subr.bf16.mxu0 %v4299_v24 }
 0x16a   :  { %4205 = vmatpush3.bf16.msra.mxu1 %v4502_v47  ;;  %4023 = vmatpush3.bf16.msra.mxu0 %v4299_v24 }
 0x16b   :  { %4004 = vmatprep.subr.mxu1 %v75_v56  ;;  %4024 = vmatprep.subr.bf16.mxu0 %v4300_v53 }
 0x16d   :  { %4002 = vmatmul.mubr.f32.vlgmr.msra.gmra.mrb[2].mxu1 %v965_v18 }
 0x16e   :  { %4005 = vmatpush3.msra.mxu1 %v75_v56  ;;  %4025 = vmatpush3.bf16.msra.mxu0 %v4300_v53 }
 0x16f   :  { %4009 = vmatprep.subr.mxu1 %v75_v56  ;;  %4026 = vmatprep.subr.bf16.mxu0 %v4301_v11 }
 0x172   :  { %4027 = vmatpush3.bf16.msra.mxu0 %v4301_v11 }
 0x173   :  { %4028 = vmatprep.subr.bf16.mxu0 %v4302_v7 }
 0x176   :  { %4029 = vmatpush3.bf16.msra.mxu0 %v4302_v7 }
 0x220   :  { %v3968_v15 = vpop.f32.mrb[0].mxu1 }
 0x221   :  { %v911_v57 = vpop.f32.mrb[1].mxu1  ;;  %v921_v63 = vmul.f32 0.00390625, %v3968_v15 }
 0x222   :  { %v920_v40 = vmul.f32 0.00390625, %v911_v57 }
 0x223   :  { %v1046_v58 = vmul.f32 %v921_v63, %v921_v63 }
 0x224   :  { %4006 = vmatprep.mubr.msk.f32.mxu1 %vm1055_vm7, %v920_v40  ;;  %v1045_v62 = vmul.f32 %v920_v40, %v920_v40 }
 0x225   :  { %4007 = vmatmul.mubr.msk.f32.vlgmr.msra.gmra.mrb[4].mxu1 %vm1055_vm7, %v921_v63  ;;  %v5853_v63 = vld [vmem:[#allocation6_spill] sm:$0xff] }
 0x226   :  { %4010 = vmatpush3.msra.mxu1 %v75_v56 }
 0x227   :  { %4207 = vmatprep.subr.bf16.mxu1 %v4433_v26 }
 0x240   :  { %v4003_v20 = vpop.f32.mrb[2].mxu1 }
 0x241   :  { %v1044_v39 = vmul.f32 0.00390625, %v4003_v20  ;;  %v1034_v55 = vpop.f32.mrb[3].mxu1 }
 0x242   :  { %v1043_v31 = vmul.f32 0.00390625, %v1034_v55 }
 0x243   :  { %v1048_v5 = vsub.f32 %v1044_v39, %v1046_v58 }
 0x244   :  { %v1047_v48 = vsub.f32 %v1043_v31, %v1045_v62 }
 0x245   :  { %v1050_v60 = vmax.f32 %v1048_v5, 0.0 }
 0x246   :  { %v1049_v6 = vmax.f32 %v1047_v48, 0.0 }
 0x247   :  { %v1052_v59 = vadd.f32 1e-05, %v1050_v60 }
 0x248   :  { %v1051_v45 = vadd.f32 1e-05, %v1049_v6 }
 0x24a   :  { %4303 = vrsqrt.f32 %v1051_v45 }
 0x24b   :  { %4305 = vrsqrt.f32 %v1052_v59  ;;  %v5854_v59 = vld [vmem:[#allocation20_spill] sm:$0xff] }
 0x254   :  { %v4304_v10 = vpop.eup %4303 }
 0x255   :  { %v4306_v34 = vpop.eup %4305  ;;  %4011 = vmatprep.mubr.msk.f32.mxu1 %vm1055_vm7, %v4304_v10  ;;  %v5855_v10 = vld [vmem:[#allocation22_spill] sm:$0xff] }
 0x256   :  { %4012 = vmatmul.mubr.msk.f32.vlgmr.msra.gmra.mrb[6].mxu1 %vm1055_vm7, %v4306_v34 }
 0x257   :  { %4209 = vmatpush3.bf16.msra.mxu1 %v4433_v26 }
 0x258   :  { %4211 = vmatprep.subr.bf16.mxu1 %v4446_v30 }
 0x25b   :  { %4213 = vmatpush3.bf16.msra.mxu1 %v4446_v30 }
 0x25c   :  { %4215 = vmatprep.subr.bf16.mxu1 %v4451_v32 }
 0x25f   :  { %4217 = vmatpush3.bf16.msra.mxu1 %v4451_v32 }
 0x260   :  { %4219 = vmatprep.subr.bf16.mxu1 %v4462_v35 }
 0x263   :  { %4221 = vmatpush3.bf16.msra.mxu1 %v4462_v35 }
 0x264   :  { %4223 = vmatprep.subr.bf16.mxu1 %v4472_v38 }
 0x267   :  { %4225 = vmatpush3.bf16.msra.mxu1 %v4472_v38 }
 0x268   :  { %4227 = vmatprep.subr.bf16.mxu1 %v4482_v41 }
 0x26b   :  { %4229 = vmatpush3.bf16.msra.mxu1 %v4482_v41 }
 0x26c   :  { %4231 = vmatprep.subr.bf16.mxu1 %v4492_v44 }
 0x26f   :  { %4233 = vmatpush3.bf16.msra.mxu1 %v4492_v44 }
 0x270   :  { %4235 = vmatprep.subr.bf16.mxu1 %v4502_v47 }
 0x273   :  { %4237 = vmatpush3.bf16.msra.mxu1 %v4502_v47 }
 0x274   :  { %4239 = vmatprep.subr.bf16.mxu1 %v4433_v26 }
 0x2f8   :  { %v4008_v4 = vpop.f32.mrb[4].mxu1 }
 0x2f9   :  { %v1128_v43 = vpop.f32.mrb[5].mxu1  ;;  %v1233_v17 = vsub.f32 %v4313_v36, %v4008_v4 }
 0x2fa   :  { %v1232_v23 = vsub.f32 %v4313_v36, %v1128_v43 }
 0x329   :  { %v4013_v22 = vpop.f32.mrb[6].mxu1 }
 0x32a   :  { %v1225_v29 = vmul.f32 %v4013_v22, %v3560_v42  ;;  %v1209_v19 = vpop.f32.mrb[7].mxu1 }
 0x32b   :  { %v1224_v46 = vmul.f32 %v3560_v42, %v1209_v19 }
 0x32c   :  { %v1235_v52 = vmul.f32 %v1233_v17, %v1225_v29  ;;  %v1295_v27 = vcombine.high %v1225_v29, %v1225_v29  ;;  %v1302_v37 = vrot.slane %v1225_v29, %v4952_v49 }
 0x32d   :  { %v1234_v21 = vmul.f32 %v1232_v23, %v1224_v46  ;;  %v1246_v50 = vcombine.high %v1224_v46, %v1224_v46  ;;  %v1253_v8 = vrot.slane %v1224_v46, %v4952_v49 }
 0x32e   :  { %v1243_v51 = vadd.f32 %v3561_v14, %v1235_v52  ;;  %v1309_v33 = vrot.slane %v1295_v27, %v4952_v49  ;;  %v1310_v9 = vcombine.high %v1302_v37, %v1302_v37  ;;  %v1318_v3 = vrot.slane %v1302_v37, %v4952_v49  ;;  %v5856_v27 = vld [vmem:[#allocation3_spill] sm:$0xff] }
 0x32f   :  { %v1242_v61 = vadd.f32 %v3561_v14, %v1234_v21  ;;  %v1260_v54 = vrot.slane %v1246_v50, %v4952_v49  ;;  %v1261_v1 = vcombine.high %v1253_v8, %v1253_v8  ;;  %v1269_v18 = vrot.slane %v1253_v8, %v4952_v49  ;;  %v5857_v8 = vld [vmem:[#allocation5_spill] sm:$0xff] }
 0x330   :  { %v1311_v56 = vcombine.high %v1309_v33, %v1309_v33  ;;  %v1325_v15 = vrot.slane %v1309_v33, %v4952_v49  ;;  %v1332_v57 = vrot.slane %v1310_v9, %v4952_v49  ;;  %v1340_v40 = vcombine.high %v1318_v3, %v1318_v3  ;;  %v5858_v33 = vld [vmem:[#allocation2_spill] sm:$0xff] }
 0x331   :  { %v1379_v20 = vrot.slane %v1318_v3, %v5853_v63  ;;  %v1507_v58 = vcombine.high %v1243_v51, %v1243_v51  ;;  %v1514_v39 = vrot.slane %v1243_v51, %v4952_v49  ;;  %v1262_v55 = vcombine.high %v1260_v54, %v1260_v54  ;;  %v5859_v3 = vld [vmem:[#allocation4_spill] sm:$0xff] }
 0x332   :  { %v4968_v62 = vrot.slane %v1311_v56, %v4952_v49  ;;  %v1341_v31 = vcombine.high %v1325_v15, %v1325_v15  ;;  %v1342_v5 = vcombine.high %v1332_v57, %v1332_v57  ;;  %v4971_v48 = vrot.slane %v1332_v57, %v5853_v63  ;;  %v5860_v56 = vld [vmem:[#allocation8_spill] sm:$0xff]  ;;  %v5861_v57 = vld [vmem:[#allocation10_spill] sm:$0xff] }
 0x333   :  { %v4974_v60 = vrot.slane %v1340_v40, %v5853_v63  ;;  %v4977_v6 = vrot.slane %v1325_v15, %v5853_v63  ;;  %v4980_v45 = vmul.f32 %v1379_v20, %v5854_v59  ;;  %v4983_v34 = vmul.f32 %v1379_v20, %v5855_v10  ;;  %v5862_v20 = vld [vmem:[#allocation7_spill] sm:$0xff] }
 0x334   :  { %v1343_v0 = vcombine.high %v4968_v62, %v4968_v62  ;;  %v4988_v2 = vrot.slane %v1342_v5, %v5853_v63  ;;  %v4992_v28 = vrot.slane %v4968_v62, %v5853_v63  ;;  %v4995_v13 = vrot.slane %v1341_v31, %v5853_v63  ;;  %v5864_v31 = vld [vmem:[#allocation12_spill] sm:$0xff] }
 0x335   :  { %v4998_v24 = vrot.slane %v1507_v58, %v4952_v49  ;;  %v1522_v53 = vcombine.high %v1514_v39, %v1514_v39  ;;  %v5001_v11 = vrot.slane %v1514_v39, %v4952_v49  ;;  %v1276_v7 = vrot.slane %v1260_v54, %v4952_v49  ;;  %v5863_v39 = vld [vmem:[#allocation9_spill] sm:$0xff] }
 0x336   :  { %v1283_v4 = vrot.slane %v1261_v1, %v4952_v49  ;;  %v1290_v43 = vrot.slane %v1262_v55, %v4952_v49  ;;  %v1291_v12 = vcombine.high %v1269_v18, %v1269_v18  ;;  %v1347_v16 = vrot.slane %v1269_v18, %v5853_v63 }
 0x337   :  { %v1523_v25 = vcombine.high %v4998_v24, %v4998_v24  ;;  %v5011_v36 = vrot.slane %v4998_v24, %v4952_v49  ;;  %v5014_v42 = vrot.slane %v1522_v53, %v4952_v49  ;;  %v1552_v22 = vcombine.high %v5001_v11, %v5001_v11 }
 0x338   :  { %v1292_v17 = vcombine.high %v1276_v7, %v1276_v7  ;;  %v1293_v29 = vcombine.high %v1283_v4, %v1283_v4  ;;  %v1294_v19 = vcombine.high %v1290_v43, %v1290_v43  ;;  %v1351_v23 = vrot.slane %v1283_v4, %v5853_v63 }
 0x339   :  { %v1355_v14 = vrot.slane %v1291_v12, %v5853_v63  ;;  %v1363_v46 = vrot.slane %v1276_v7, %v5853_v63  ;;  %v1367_v52 = vrot.slane %v1290_v43, %v5853_v63  ;;  %v1424_v37 = vmul.f32 %v1347_v16, %v5856_v27  ;;  %v5865_v7 = vld [vmem:[#allocation14_spill] sm:$0xff]  ;;  %v5866_v43 = vld [vmem:[#allocation11_spill] sm:$0xff] }
 0x33a   :  { %v1359_v21 = vrot.slane %v1293_v29, %v5853_v63  ;;  %v1371_v50 = vrot.slane %v1292_v17, %v5853_v63  ;;  %v1425_v51 = vmul.f32 %v1347_v16, %v5857_v8  ;;  %v1426_v9 = vmul.f32 %v5858_v33, %v1351_v23  ;;  %v5868_v17 = vld [vmem:[#allocation16_spill] sm:$0xff] }
 0x33b   :  { %v1427_v54 = vmul.f32 %v5859_v3, %v1351_v23  ;;  %v1458_v1 = vcombine.high %v1242_v61, %v1242_v61  ;;  %v1465_v18 = vrot.slane %v1242_v61, %v4952_v49  ;;  %v1428_v15 = vmul.f32 %v1355_v14, %v5860_v56  ;;  %v5867_v61 = vld [vmem:[#allocation13_spill] sm:$0xff]  ;;  %v5869_v23 = vld [vmem:[#allocation18_spill] sm:$0xff] }
 0x33c   :  { %v1429_v40 = vmul.f32 %v1355_v14, %v5861_v57  ;;  %v1430_v58 = vmul.f32 %v5862_v20, %v1359_v21  ;;  %v1431_v55 = vmul.f32 %v5863_v39, %v1359_v21  ;;  %v1432_v5 = vmul.f32 %v1363_v46, %v5864_v31 }
 0x33d   :  { %v1472_v59 = vrot.slane %v1458_v1, %v4952_v49  ;;  %v1473_v10 = vcombine.high %v1465_v18, %v1465_v18  ;;  %v1481_v53 = vrot.slane %v1465_v18, %v4952_v49  ;;  %v1433_v4 = vmul.f32 %v1363_v46, %v5865_v7  ;;  %v5870_v1 = vld [vmem:[#allocation19_spill] sm:$0xff] }
 0x33e   :  { %v5038_v12 = vmul.f32 %v5866_v43, %v1367_v52  ;;  %v5041_v16 = vmul.f32 %v5867_v61, %v1367_v52  ;;  %v5044_v29 = vmul.f32 %v1371_v50, %v5868_v17  ;;  %v5047_v14 = vmul.f32 %v1371_v50, %v5869_v23 }
 0x33f   :  { %v1474_v27 = vcombine.high %v1472_v59, %v1472_v59  ;;  %v1488_v21 = vrot.slane %v1472_v59, %v4952_v49  ;;  %v1495_v8 = vrot.slane %v1473_v10, %v4952_v49  ;;  %v1503_v33 = vcombine.high %v1481_v53, %v1481_v53 }
 0x340   :  { %v1559_v46 = vrot.slane %v1481_v53, %v5853_v63  ;;  %v5053_v3 = vrot.slane %v1294_v19, %v5853_v63  ;;  %v5057_v52 = vrot.slane %v5001_v11, %v5853_v63  ;;  %v5061_v18 = vmul.f32 %v5870_v1, %v4971_v48 }
 0x341   :  { %v1563_v50 = vrot.slane %v1495_v8, %v5853_v63  ;;  %v1567_v56 = vrot.slane %v1503_v33, %v5853_v63  ;;  %v1505_v57 = vcombine.high %v1495_v8, %v1495_v8  ;;  %v1575_v20 = vrot.slane %v1488_v21, %v5853_v63 }
 0x342   :  { %v1636_v39 = vadd.f32 %v1559_v46, %v1424_v37  ;;  %v1637_v31 = vadd.f32 %v1559_v46, %v1425_v51  ;;  %v5067_v19 = vrot.slane %v1474_v27, %v4952_v49  ;;  %v1504_v59 = vcombine.high %v1488_v21, %v1488_v21 }
 0x343   :  { %v1638_v10 = vadd.f32 %v1563_v50, %v1426_v9  ;;  %v1639_v53 = vadd.f32 %v1563_v50, %v1427_v54  ;;  %v1640_v7 = vadd.f32 %v1567_v56, %v1428_v15  ;;  %v1641_v43 = vadd.f32 %v1567_v56, %v1429_v40 }
 0x344   :  { %vm1668_vm8 = vcmp.gt.f32.partialorder %v1636_v39, 0.0  ;;  %vm1669_vm9 = vcmp.gt.f32.partialorder %v1637_v31, 0.0  ;;  %v1700_v61 = vmul.f32 0.1, %v1636_v39  ;;  %v1701_v17 = vmul.f32 0.1, %v1637_v31 }
 0x345   :  { %vm1670_vm10 = vcmp.gt.f32.partialorder %v1638_v10, 0.0  ;;  %vm1671_vm11 = vcmp.gt.f32.partialorder %v1639_v53, 0.0  ;;  %v1702_v23 = vmul.f32 0.1, %v1638_v10  ;;  %v1703_v8 = vmul.f32 0.1, %v1639_v53 }
 0x346   :  { %v1732_v33 = vsel %vm1668_vm8, %v1636_v39, %v1700_v61  ;;  %v1733_v1 = vsel %vm1669_vm9, %v1637_v31, %v1701_v17  ;;  %vm1672_vm12 = vcmp.gt.f32.partialorder %v1640_v7, 0.0  ;;  %vm1673_vm13 = vcmp.gt.f32.partialorder %v1641_v43, 0.0 }
 0x347   :  { %v1764_v37 = vpack.c.bf16 %v1733_v1, %v1732_v33  ;;  %v1734_v51 = vsel %vm1670_vm10, %v1638_v10, %v1702_v23  ;;  %v1735_v27 = vsel %vm1671_vm11, %v1639_v53, %v1703_v8  ;;  %v1704_v21 = vmul.f32 0.1, %v1640_v7 }
 0x348   :  { %v1765_v9 = vpack.c.bf16 %v1735_v27, %v1734_v51  ;;  %v1705_v54 = vmul.f32 0.1, %v1641_v43  ;;  %v1571_v15 = vrot.slane %v1505_v57, %v5853_v63  ;;  %v1644_v40 = vadd.f32 %v1575_v20, %v1432_v5 }
 0x349   :  { %4030 = vmatprep.mubr.bf16.mxu0 %v1764_v37  ;;  %v1736_v46 = vsel %vm1672_vm12, %v1640_v7, %v1704_v21  ;;  %v1645_v50 = vadd.f32 %v1575_v20, %v1433_v4  ;;  %v1579_v56 = vrot.slane %v5067_v19, %v5853_v63  ;;  %v1583_v39 = vrot.slane %v1504_v59, %v5853_v63 }
 0x34a   :  { %4031 = vmatmul.mubr.bf16.vlgmr.msra.gmra.mrb[32].mxu0 %v1765_v9  ;;  %v1737_v31 = vsel %vm1673_vm13, %v1641_v43, %v1705_v54  ;;  %v1642_v61 = vadd.f32 %v1571_v15, %v1430_v58  ;;  %v1643_v17 = vadd.f32 %v1571_v15, %v1431_v55  ;;  %vm1676_vm14 = vcmp.gt.f32.partialorder %v1644_v40, 0.0  ;;  %v5871_v9 = vld [vmem:[#allocation15_spill] sm:$0xff] }
 0x34b   :  { %v1766_v10 = vpack.c.bf16 %v1737_v31, %v1736_v46  ;;  %vm1677_vm15 = vcmp.gt.f32.partialorder %v1645_v50, 0.0  ;;  %v1708_v53 = vmul.f32 0.1, %v1644_v40  ;;  %v1709_v23 = vmul.f32 0.1, %v1645_v50 }
 0x34c   :  { %vm1674_vm8 = vcmp.gt.f32.partialorder %v1642_v61, 0.0  ;;  %vm1675_vm9 = vcmp.gt.f32.partialorder %v1643_v17, 0.0  ;;  %v1706_v5 = vmul.f32 0.1, %v1642_v61  ;;  %v1707_v57 = vmul.f32 0.1, %v1643_v17 }
 0x34d   :  { %4034 = vmatprep.mubr.bf16.mxu0 %v1766_v10  ;;  %v1740_v4 = vsel %vm1676_vm14, %v1644_v40, %v1708_v53  ;;  %v1741_v20 = vsel %vm1677_vm15, %v1645_v50, %v1709_v23  ;;  %v1646_v7 = vadd.f32 %v1579_v56, %v5038_v12  ;;  %v1647_v59 = vadd.f32 %v1579_v56, %v5041_v16  ;;  %v5872_v16 = vld [vmem:[#allocation17_spill] sm:$0xff] }
 0x34e   :  { %v1738_v8 = vsel %vm1674_vm8, %v1642_v61, %v1706_v5  ;;  %v1739_v43 = vsel %vm1675_vm9, %v1643_v17, %v1707_v57  ;;  %v1768_v58 = vpack.c.bf16 %v1741_v20, %v1740_v4  ;;  %v1648_v55 = vadd.f32 %v1583_v39, %v5044_v29  ;;  %v5874_v17 = vld [vmem:[#allocation24_spill] sm:$0xff] }
 0x34f   :  { %v1767_v33 = vpack.c.bf16 %v1739_v43, %v1738_v8  ;;  %vm1678_vm10 = vcmp.gt.f32.partialorder %v1646_v7, 0.0  ;;  %vm1679_vm11 = vcmp.gt.f32.partialorder %v1647_v59, 0.0  ;;  %v1710_v1 = vmul.f32 0.1, %v1646_v7 }
 0x350   :  { %v1711_v37 = vmul.f32 0.1, %v1647_v59  ;;  %v1649_v51 = vadd.f32 %v1583_v39, %v5047_v14  ;;  %vm1680_vm12 = vcmp.gt.f32.partialorder %v1648_v55, 0.0  ;;  %v1712_v27 = vmul.f32 0.1, %v1648_v55 }
 0x351   :  { %v1742_v21 = vsel %vm1678_vm10, %v1646_v7, %v1710_v1  ;;  %v1438_v12 = vmul.f32 %v5871_v9, %v5053_v3  ;;  %v1439_v54 = vmul.f32 %v5872_v16, %v5053_v3  ;;  %v1506_v15 = vcombine.high %v5067_v19, %v5067_v19  ;;  %v5873_v3 = vld [vmem:[#allocation21_spill] sm:$0xff]  ;;  %v5875_v1 = vld [vmem:[#allocation26_spill] sm:$0xff] }
 0x352   :  { %4035 = vmatmul.mubr.bf16.gmra.mrb[36].mxu0 %v1767_v33  ;;  %v1743_v29 = vsel %vm1679_vm11, %v1647_v59, %v1711_v37  ;;  %vm1681_vm13 = vcmp.gt.f32.partialorder %v1649_v51, 0.0  ;;  %v1713_v40 = vmul.f32 0.1, %v1649_v51  ;;  %v1744_v46 = vsel %vm1680_vm12, %v1648_v55, %v1712_v27  ;;  %v5876_v27 = vld [vmem:[#allocation23_spill] sm:$0xff]  ;;  %v5877_v9 = vld [vmem:[#allocation25_spill] sm:$0xff] }
 0x353   :  { %4038 = vmatprep.mubr.bf16.mxu0 %v1768_v58  ;;  %v1769_v50 = vpack.c.bf16 %v1743_v29, %v1742_v21  ;;  %v1587_v14 = vrot.slane %v1506_v15, %v5853_v63  ;;  %v1652_v56 = vadd.f32 %v5057_v52, %v4980_v45  ;;  %v1653_v39 = vadd.f32 %v5057_v52, %v4983_v34  ;;  %v5878_v15 = vld [vmem:[#allocation28_spill] sm:$0xff]  ;;  %v5879_v29 = vld [vmem:[#allocation30_spill] sm:$0xff] }
 0x354   :  { %v1745_v31 = vsel %vm1681_vm13, %v1649_v51, %v1713_v40  ;;  %v1443_v61 = vmul.f32 %v5873_v3, %v4971_v48  ;;  %v1595_v19 = vrot.slane %v5014_v42, %v5853_v63  ;;  %v1444_v10 = vmul.f32 %v4974_v60, %v5874_v17 }
 0x355   :  { %v1770_v53 = vpack.c.bf16 %v1745_v31, %v1744_v46  ;;  %v1650_v23 = vadd.f32 %v1587_v14, %v1438_v12  ;;  %v1651_v5 = vadd.f32 %v1587_v14, %v1439_v54  ;;  %vm1684_vm14 = vcmp.gt.f32.partialorder %v1652_v56, 0.0 }
 0x356   :  { %vm1685_vm15 = vcmp.gt.f32.partialorder %v1653_v39, 0.0  ;;  %v1716_v57 = vmul.f32 0.1, %v1652_v56  ;;  %v1717_v45 = vmul.f32 0.1, %v1653_v39  ;;  %v1654_v4 = vadd.f32 %v1595_v19, %v5061_v18 }
 0x357   :  { %vm1682_vm8 = vcmp.gt.f32.partialorder %v1650_v23, 0.0  ;;  %vm1683_vm9 = vcmp.gt.f32.partialorder %v1651_v5, 0.0  ;;  %v1714_v34 = vmul.f32 0.1, %v1650_v23  ;;  %v1715_v52 = vmul.f32 0.1, %v1651_v5 }
 0x358   :  { %v1748_v48 = vsel %vm1684_vm14, %v1652_v56, %v1716_v57  ;;  %v1749_v20 = vsel %vm1685_vm15, %v1653_v39, %v1717_v45  ;;  %v1655_v7 = vadd.f32 %v1595_v19, %v1443_v61  ;;  %vm1686_vm10 = vcmp.gt.f32.partialorder %v1654_v4, 0.0  ;;  %v5881_v39 = vld [vmem:[#allocation29_spill] sm:$0xff]  ;;  %v5882_v57 = vld [vmem:[#allocation32_spill] sm:$0xff] }
 0x359   :  { %v1746_v59 = vsel %vm1682_vm8, %v1650_v23, %v1714_v34  ;;  %v1747_v8 = vsel %vm1683_vm9, %v1651_v5, %v1715_v52  ;;  %v1772_v43 = vpack.c.bf16 %v1749_v20, %v1748_v48  ;;  %v1718_v58 = vmul.f32 0.1, %v1654_v4 }
 0x35a   :  { %4039 = vmatmul.mubr.bf16.gmra.mrb[40].mxu0 %v1769_v50  ;;  %v1771_v55 = vpack.c.bf16 %v1747_v8, %v1746_v59  ;;  %vm1687_vm11 = vcmp.gt.f32.partialorder %v1655_v7, 0.0  ;;  %v1719_v33 = vmul.f32 0.1, %v1655_v7  ;;  %v1445_v37 = vmul.f32 %v4974_v60, %v5875_v1  ;;  %v5883_v8 = vld [vmem:[#allocation34_spill] sm:$0xff] }
 0x35b   :  { %4042 = vmatprep.mubr.bf16.mxu0 %v1770_v53  ;;  %v1750_v18 = vsel %vm1686_vm10, %v1654_v4, %v1718_v58  ;;  %v1599_v51 = vrot.slane %v1552_v22, %v5853_v63  ;;  %v1446_v21 = vmul.f32 %v5876_v27, %v4988_v2  ;;  %v1447_v12 = vmul.f32 %v5877_v9, %v4988_v2  ;;  %v5880_v2 = vld [vmem:[#allocation27_spill] sm:$0xff] }
 0x35c   :  { %v1751_v16 = vsel %vm1687_vm11, %v1655_v7, %v1719_v33  ;;  %v1554_v54 = vcombine.high %v5014_v42, %v5014_v42  ;;  %v1448_v60 = vmul.f32 %v4977_v6, %v5878_v15  ;;  %v1449_v40 = vmul.f32 %v4977_v6, %v5879_v29 }
 0x35d   :  { %v1773_v46 = vpack.c.bf16 %v1751_v16, %v1750_v18  ;;  %v1656_v50 = vadd.f32 %v1599_v51, %v1444_v10  ;;  %v1657_v11 = vadd.f32 %v1599_v51, %v1445_v37  ;;  %v1607_v22 = vrot.slane %v5011_v36, %v5853_v63 }
 0x35e   :  { %v1603_v14 = vrot.slane %v1554_v54, %v5853_v63  ;;  %v1450_v56 = vmul.f32 %v5880_v2, %v4992_v28  ;;  %v1451_v42 = vmul.f32 %v5881_v39, %v4992_v28  ;;  %v1551_v31 = vrot.slane %v1523_v25, %v4952_v49  ;;  %v5884_v54 = vld [vmem:[#allocation31_spill] sm:$0xff] }
 0x35f   :  { %vm1688_vm12 = vcmp.gt.f32.partialorder %v1656_v50, 0.0  ;;  %vm1689_vm13 = vcmp.gt.f32.partialorder %v1657_v11, 0.0  ;;  %v1720_v6 = vmul.f32 0.1, %v1656_v50  ;;  %v1721_v3 = vmul.f32 0.1, %v1657_v11 }
 0x360   :  { %v1658_v61 = vadd.f32 %v1603_v14, %v1446_v21  ;;  %v1659_v19 = vadd.f32 %v1603_v14, %v1447_v12  ;;  %v1660_v17 = vadd.f32 %v1607_v22, %v1448_v60  ;;  %v1661_v10 = vadd.f32 %v1607_v22, %v1449_v40  ;;  %v5885_v60 = vld [vmem:[#allocation33_spill] sm:$0xff] }
 0x361   :  { %v1752_v53 = vsel %vm1688_vm12, %v1656_v50, %v1720_v6  ;;  %v1753_v23 = vsel %vm1689_vm13, %v1657_v11, %v1721_v3  ;;  %v1611_v5 = vrot.slane %v1551_v31, %v5853_v63  ;;  %v1452_v28 = vmul.f32 %v4995_v13, %v5882_v57 }
 0x362   :  { %4043 = vmatmul.mubr.bf16.gmra.mrb[44].mxu0 %v1771_v55  ;;  %v1774_v45 = vpack.c.bf16 %v1753_v23, %v1752_v53  ;;  %vm1690_vm14 = vcmp.gt.f32.partialorder %v1658_v61, 0.0  ;;  %vm1691_vm15 = vcmp.gt.f32.partialorder %v1659_v19, 0.0  ;;  %v1722_v24 = vmul.f32 0.1, %v1658_v61 }
 0x363   :  { %4046 = vmatprep.mubr.bf16.mxu0 %v1772_v43  ;;  %v1723_v25 = vmul.f32 0.1, %v1659_v19  ;;  %vm1692_vm8 = vcmp.gt.f32.partialorder %v1660_v17, 0.0  ;;  %vm1693_vm9 = vcmp.gt.f32.partialorder %v1661_v10, 0.0  ;;  %v1724_v4 = vmul.f32 0.1, %v1660_v17 }
 0x364   :  { %v1754_v34 = vsel %vm1690_vm14, %v1658_v61, %v1722_v24  ;;  %v1725_v52 = vmul.f32 0.1, %v1661_v10  ;;  %v1662_v48 = vadd.f32 %v1611_v5, %v1450_v56  ;;  %v1663_v20 = vadd.f32 %v1611_v5, %v1451_v42  ;;  %v5144_v61 = vld [vmem:[%s5737_s2 + $0x1] sm:$0x1] }
 0x365   :  { %v1755_v7 = vsel %vm1691_vm15, %v1659_v19, %v1723_v25  ;;  %v1756_v59 = vsel %vm1692_vm8, %v1660_v17, %v1724_v4  ;;  %v1453_v58 = vmul.f32 %v4995_v13, %v5883_v8  ;;  %v1553_v55 = vcombine.high %v5011_v36, %v5011_v36 }
 0x366   :  { %v1775_v33 = vpack.c.bf16 %v1755_v7, %v1754_v34  ;;  %v1757_v1 = vsel %vm1693_vm9, %v1661_v10, %v1725_v52  ;;  %vm1694_vm10 = vcmp.gt.f32.partialorder %v1662_v48, 0.0  ;;  %vm1695_vm11 = vcmp.gt.f32.partialorder %v1663_v20, 0.0 }
 0x367   :  { %v1776_v43 = vpack.c.bf16 %v1757_v1, %v1756_v59  ;;  %v1726_v37 = vmul.f32 0.1, %v1662_v48  ;;  %v1727_v18 = vmul.f32 0.1, %v1663_v20  ;;  %v1615_v51 = vrot.slane %v1553_v55, %v5853_v63 }
 0x368   :  { %v1407_v27 = vrot.slane %v1343_v0, %v5853_v63  ;;  %v1555_v21 = vcombine.high %v1551_v31, %v1551_v31  ;;  %v2268_v57 = vmul.f32 16.0, %v5144_v61  ;;  %v2291_v4 = vmul.f32 2.0, %v5144_v61 }
 0x369   :  { %v1758_v9 = vsel %vm1694_vm10, %v1662_v48, %v1726_v37  ;;  %v1759_v13 = vsel %vm1695_vm11, %v1663_v20, %v1727_v18  ;;  %v1664_v12 = vadd.f32 %v1615_v51, %v1452_v28  ;;  %v1665_v16 = vadd.f32 %v1615_v51, %v1453_v58 }
 0x36a   :  { %4047 = vmatmul.mubr.bf16.gmra.mrb[48].mxu0 %v1773_v46  ;;  %v1777_v36 = vpack.c.bf16 %v1759_v13, %v1758_v9  ;;  %v1454_v15 = vmul.f32 %v5884_v54, %v1407_v27  ;;  %v1455_v29 = vmul.f32 %v5885_v60, %v1407_v27  ;;  %v1619_v40 = vrot.slane %v1555_v21, %v5853_v63 }
 0x36b   :  { %4050 = vmatprep.mubr.bf16.mxu0 %v1774_v45  ;;  %vm1696_vm12 = vcmp.gt.f32.partialorder %v1664_v12, 0.0  ;;  %vm1697_vm13 = vcmp.gt.f32.partialorder %v1665_v16, 0.0  ;;  %v1728_v50 = vmul.f32 0.1, %v1664_v12  ;;  %v1729_v11 = vmul.f32 0.1, %v1665_v16 }
 0x36c   :  { %v1666_v62 = vadd.f32 %v1619_v40, %v1454_v15  ;;  %v1667_v0 = vadd.f32 %v1619_v40, %v1455_v29  ;;  %v2380_v34 = vmul.f32 %v5144_v61, %v5144_v61  ;;  %v5167_v59 = vrot.slane %v2268_v57, %v5853_v63 }
 0x36d   :  { %v1760_v22 = vsel %vm1696_vm12, %v1664_v12, %v1728_v50  ;;  %v1761_v14 = vsel %vm1697_vm13, %v1665_v16, %v1729_v11  ;;  %v5174_v37 = vrot.slane %v2291_v4, %v5853_v63 }
 0x36e   :  { %v1778_v2 = vpack.c.bf16 %v1761_v14, %v1760_v22  ;;  %vm1698_vm14 = vcmp.gt.f32.partialorder %v1666_v62, 0.0  ;;  %vm1699_vm15 = vcmp.gt.f32.partialorder %v1667_v0, 0.0  ;;  %v1730_v46 = vmul.f32 0.1, %v1666_v62 }
 0x36f   :  { %v1731_v56 = vmul.f32 0.1, %v1667_v0  ;;  %v2381_v18 = vmul.f32 16.0, %v2380_v34 }
 0x370   :  { %v1762_v39 = vsel %vm1698_vm14, %v1666_v62, %v1730_v46 }
 0x371   :  { %v1763_v42 = vsel %vm1699_vm15, %v1667_v0, %v1731_v56  ;;  %v5199_v34 = vrot.slane %v2381_v18, %v5853_v63 }
 0x372   :  { %4051 = vmatmul.mubr.bf16.gmra.mrb[52].mxu0 %v1775_v33  ;;  %v1779_v31 = vpack.c.bf16 %v1763_v42, %v1762_v39 }
 0x373   :  { %4054 = vmatprep.mubr.bf16.mxu0 %v1776_v43 }
 0x37a   :  { %4055 = vmatmul.mubr.bf16.gmra.mrb[56].mxu0 %v1777_v36 }
 0x37b   :  { %4058 = vmatprep.mubr.bf16.mxu0 %v1778_v2 }
 0x382   :  { %4059 = vmatmul.mubr.bf16.gmra.mrb[60].mxu0 %v1779_v31 }
 0x41d   :  { %v5137_v6 = vpop.f32.mrb[32].mxu0 }
 0x41e   :  { %5886 = vst [vmem:[#allocation6_spill] sm:$0xff] %v5137_v6  ;;  %v5139_v3 = vpop.f32.mrb[33].mxu0  ;;  %v2126_v17 = vmul.f32 %v5137_v6, %v5137_v6 }
 0x41f   :  { %5887 = vst [vmem:[#allocation20_spill] sm:$0xff] %v5139_v3  ;;  %v5146_v19 = vpop.f32.mrb[34].mxu0  ;;  %v2124_v5 = vmul.f32 %v5139_v3, %v5139_v3 }
 0x420   :  { %5888 = vst [vmem:[#allocation22_spill] sm:$0xff] %v5146_v19  ;;  %v2019_v10 = vadd.f32 %v5146_v19, %v5137_v6  ;;  %v2127_v53 = vmul.f32 %v5146_v19, %v5146_v19  ;;  %v5154_v23 = vpop.f32.mrb[35].mxu0 }
 0x421   :  { %5889 = vst [vmem:[#allocation3_spill] sm:$0xff] %v5154_v23  ;;  %v2012_v28 = vadd.f32 %v5154_v23, %v5139_v3  ;;  %v2125_v45 = vmul.f32 %v5154_v23, %v5154_v23 }
 0x422   :  { %v2020_v24 = vrot.slane %v2019_v10, 4  ;;  %v2163_v25 = vadd.f32 %v2127_v53, %v2126_v17 }
 0x423   :  { %v2013_v52 = vrot.slane %v2012_v28, 4  ;;  %v2156_v48 = vadd.f32 %v2125_v45, %v2124_v5 }
 0x424   :  { %v2021_v20 = vadd.f32 %v2020_v24, %v2019_v10  ;;  %v2164_v7 = vrot.slane %v2163_v25, 4 }
 0x425   :  { %v2014_v8 = vadd.f32 %v2013_v52, %v2012_v28  ;;  %v2157_v58 = vrot.slane %v2156_v48, 4  ;;  %v5169_v55 = vpop.f32.mrb[36].mxu0 }
 0x426   :  { %5890 = vst [vmem:[#allocation5_spill] sm:$0xff] %v5169_v55  ;;  %v2022_v33 = vrot.slane %v2021_v20, 2  ;;  %v2165_v1 = vadd.f32 %v2164_v7, %v2163_v25  ;;  %v5171_v43 = vpop.f32.mrb[37].mxu0  ;;  %v2130_v21 = vmul.f32 %v5169_v55, %v5169_v55 }
 0x427   :  { %5891 = vst [vmem:[#allocation2_spill] sm:$0xff] %v5171_v43  ;;  %v2015_v51 = vrot.slane %v2014_v8, 2  ;;  %v2158_v27 = vadd.f32 %v2157_v58, %v2156_v48  ;;  %v2128_v9 = vmul.f32 %v5171_v43, %v5171_v43  ;;  %v5180_v13 = vpop.f32.mrb[38].mxu0 }
 0x428   :  { %5892 = vst [vmem:[#allocation4_spill] sm:$0xff] %v5180_v13  ;;  %v2023_v12 = vadd.f32 %v2022_v33, %v2021_v20  ;;  %v2166_v16 = vrot.slane %v2165_v1, 2  ;;  %v2033_v36 = vadd.f32 %v5180_v13, %v5169_v55  ;;  %v2131_v54 = vmul.f32 %v5180_v13, %v5180_v13  ;;  %v5186_v15 = vpop.f32.mrb[39].mxu0 }
 0x429   :  { %5893 = vst [vmem:[#allocation8_spill] sm:$0xff] %v5186_v15  ;;  %v2016_v60 = vadd.f32 %v2015_v51, %v2014_v8  ;;  %v2159_v29 = vrot.slane %v2158_v27, 2  ;;  %v2026_v40 = vadd.f32 %v5186_v15, %v5171_v43  ;;  %v2129_v50 = vmul.f32 %v5186_v15, %v5186_v15 }
 0x42a   :  { %v2024_v11 = vrot.slane %v2023_v12, 1  ;;  %v2167_v62 = vadd.f32 %v2166_v16, %v2165_v1  ;;  %v2034_v0 = vrot.slane %v2033_v36, 4  ;;  %v2177_v22 = vadd.f32 %v2131_v54, %v2130_v21 }
 0x42b   :  { %v2017_v14 = vrot.slane %v2016_v60, 1  ;;  %v2160_v2 = vadd.f32 %v2159_v29, %v2158_v27  ;;  %v2027_v46 = vrot.slane %v2026_v40, 4  ;;  %v2170_v56 = vadd.f32 %v2129_v50, %v2128_v9 }
 0x42c   :  { %v2025_v39 = vadd.f32 %v2024_v11, %v2023_v12  ;;  %v2168_v42 = vrot.slane %v2167_v62, 1  ;;  %v2035_v31 = vadd.f32 %v2034_v0, %v2033_v36  ;;  %v2178_v17 = vrot.slane %v2177_v22, 4 }
 0x42d   :  { %v2018_v10 = vadd.f32 %v2017_v14, %v2016_v60  ;;  %v2161_v53 = vrot.slane %v2160_v2, 1  ;;  %v2028_v5 = vadd.f32 %v2027_v46, %v2026_v40  ;;  %v2171_v57 = vrot.slane %v2170_v56, 4  ;;  %v5192_v28 = vpop.f32.mrb[40].mxu0 }
 0x42e   :  { %5894 = vst [vmem:[#allocation10_spill] sm:$0xff] %v5192_v28  ;;  %v5194_v45 = vadd.f32 %v2168_v42, %v2167_v62  ;;  %v2036_v24 = vrot.slane %v2035_v31, 2  ;;  %v2179_v25 = vadd.f32 %v2178_v17, %v2177_v22  ;;  %v5196_v4 = vpop.f32.mrb[41].mxu0  ;;  %v5202_v52 = vadd.f32 %v5167_v59, %v2025_v39 }
 0x42f   :  { %5895 = vst [vmem:[#allocation7_spill] sm:$0xff] %v5196_v4  ;;  %v5204_v48 = vadd.f32 %v2161_v53, %v2160_v2  ;;  %v2314_v20 = vsel %vm702_vm0, %v2025_v39, %v2018_v10  ;;  %v2029_v7 = vrot.slane %v2028_v5, 2  ;;  %v5207_v8 = vpop.f32.mrb[42].mxu0  ;;  %v5210_v58 = vadd.f32 %v5167_v59, %v2018_v10 }
 0x430   :  { %5896 = vst [vmem:[#allocation9_spill] sm:$0xff] %v5207_v8  ;;  %v2037_v33 = vadd.f32 %v2036_v24, %v2035_v31  ;;  %v2180_v1 = vrot.slane %v2179_v25, 2  ;;  %v2172_v51 = vadd.f32 %v2171_v57, %v2170_v56  ;;  %v5212_v27 = vpop.f32.mrb[43].mxu0  ;;  %v2134_v21 = vmul.f32 %v5192_v28, %v5192_v28 }
 0x431   :  { %5897 = vst [vmem:[#allocation12_spill] sm:$0xff] %v5212_v27  ;;  %v2030_v18 = vadd.f32 %v2029_v7, %v2028_v5  ;;  %v2132_v9 = vmul.f32 %v5196_v4, %v5196_v4  ;;  %v2047_v12 = vadd.f32 %v5207_v8, %v5192_v28  ;;  %v2135_v60 = vmul.f32 %v5207_v8, %v5207_v8 }
 0x432   :  { %v2038_v16 = vrot.slane %v2037_v33, 1  ;;  %v2181_v36 = vadd.f32 %v2180_v1, %v2179_v25  ;;  %v2173_v54 = vrot.slane %v2172_v51, 2  ;;  %v2040_v50 = vadd.f32 %v5212_v27, %v5196_v4 }
 0x433   :  { %v2031_v29 = vrot.slane %v2030_v18, 1  ;;  %v2048_v40 = vrot.slane %v2047_v12, 4  ;;  %v2133_v11 = vmul.f32 %v5212_v27, %v5212_v27  ;;  %v2191_v14 = vadd.f32 %v2135_v60, %v2134_v21 }
 0x434   :  { %v2039_v62 = vadd.f32 %v2038_v16, %v2037_v33  ;;  %v2182_v0 = vrot.slane %v2181_v36, 1  ;;  %v2174_v22 = vadd.f32 %v2173_v54, %v2172_v51  ;;  %v2041_v56 = vrot.slane %v2040_v50, 4 }
 0x435   :  { %v2032_v2 = vadd.f32 %v2031_v29, %v2030_v18  ;;  %v2049_v46 = vadd.f32 %v2048_v40, %v2047_v12  ;;  %v2184_v39 = vadd.f32 %v2133_v11, %v2132_v9  ;;  %v5226_v42 = vpop.f32.mrb[44].mxu0  ;;  %v2192_v53 = vrot.slane %v2191_v14, 4 }
 0x436   :  { %5898 = vst [vmem:[#allocation14_spill] sm:$0xff] %v5226_v42  ;;  %v5230_v17 = vadd.f32 %v5167_v59, %v2039_v62  ;;  %v2175_v10 = vrot.slane %v2174_v22, 1  ;;  %v5232_v5 = vpop.f32.mrb[45].mxu0  ;;  %v5234_v57 = vadd.f32 %v2182_v0, %v2181_v36  ;;  %v2042_v7 = vadd.f32 %v2041_v56, %v2040_v50 }
 0x437   :  { %5899 = vst [vmem:[#allocation11_spill] sm:$0xff] %v5232_v5  ;;  %v2315_v24 = vsel %vm704_vm1, %v2032_v2, %v2314_v20  ;;  %v2050_v25 = vrot.slane %v2049_v46, 2  ;;  %v5237_v33 = vpop.f32.mrb[46].mxu0  ;;  %v5241_v51 = vadd.f32 %v5167_v59, %v2032_v2  ;;  %v2193_v18 = vadd.f32 %v2192_v53, %v2191_v14 }
 0x438   :  { %5900 = vst [vmem:[#allocation13_spill] sm:$0xff] %v5237_v33  ;;  %v2185_v21 = vrot.slane %v2184_v39, 4  ;;  %v5243_v9 = vpop.f32.mrb[47].mxu0  ;;  %v5245_v12 = vadd.f32 %v2175_v10, %v2174_v22  ;;  %v2043_v36 = vrot.slane %v2042_v7, 2  ;;  %v2316_v54 = vsel %vm706_vm2, %v2039_v62, %v2315_v24 }
 0x439   :  { %5901 = vst [vmem:[#allocation16_spill] sm:$0xff] %v5243_v9  ;;  %v2051_v16 = vadd.f32 %v2050_v25, %v2049_v46  ;;  %v2194_v20 = vrot.slane %v2193_v18, 2  ;;  %v2138_v29 = vmul.f32 %v5226_v42, %v5226_v42  ;;  %v2136_v40 = vmul.f32 %v5232_v5, %v5232_v5 }
 0x43a   :  { %v2186_v60 = vadd.f32 %v2185_v21, %v2184_v39  ;;  %v2044_v11 = vadd.f32 %v2043_v36, %v2042_v7  ;;  %v2061_v0 = vadd.f32 %v5237_v33, %v5226_v42  ;;  %v2139_v22 = vmul.f32 %v5237_v33, %v5237_v33 }
 0x43b   :  { %v2052_v50 = vrot.slane %v2051_v16, 1  ;;  %v2195_v14 = vadd.f32 %v2194_v20, %v2193_v18  ;;  %v2054_v62 = vadd.f32 %v5243_v9, %v5232_v5  ;;  %v2137_v46 = vmul.f32 %v5243_v9, %v5243_v9 }
 0x43c   :  { %v2187_v2 = vrot.slane %v2186_v60, 2  ;;  %v2045_v39 = vrot.slane %v2044_v11, 1  ;;  %v2062_v10 = vrot.slane %v2061_v0, 4  ;;  %v2205_v53 = vadd.f32 %v2139_v22, %v2138_v29 }
 0x43d   :  { %v5261_v24 = vpop.f32.mrb[48].mxu0  ;;  %v2196_v25 = vrot.slane %v2195_v14, 1  ;;  %v2055_v21 = vrot.slane %v2054_v62, 4  ;;  %v2198_v36 = vadd.f32 %v2137_v46, %v2136_v40  ;;  %v5265_v18 = vadd.f32 %v2052_v50, %v2051_v16 }
 0x43e   :  { %5902 = vst [vmem:[#allocation18_spill] sm:$0xff] %v5261_v24  ;;  %v2188_v7 = vadd.f32 %v2187_v2, %v2186_v60  ;;  %v5263_v1 = vpop.f32.mrb[49].mxu0  ;;  %v2046_v20 = vadd.f32 %v2045_v39, %v2044_v11  ;;  %v2063_v31 = vadd.f32 %v2062_v10, %v2061_v0  ;;  %v2206_v33 = vrot.slane %v2205_v53, 4 }
 0x43f   :  { %5903 = vst [vmem:[#allocation19_spill] sm:$0xff] %v5263_v1  ;;  %v5267_v42 = vpop.f32.mrb[50].mxu0  ;;  %v2056_v56 = vadd.f32 %v2055_v21, %v2054_v62  ;;  %v2199_v5 = vrot.slane %v2198_v36, 4  ;;  %v2142_v29 = vmul.f32 %v5261_v24, %v5261_v24  ;;  %v5277_v11 = vadd.f32 %v2196_v25, %v2195_v14 }
 0x440   :  { %5904 = vst [vmem:[#allocation15_spill] sm:$0xff] %v5267_v42  ;;  %v2189_v9 = vrot.slane %v2188_v7, 1  ;;  %v5271_v22 = vpop.f32.mrb[51].mxu0  ;;  %v5274_v60 = vadd.f32 %v5167_v59, %v2046_v20  ;;  %v2317_v40 = vsel %vm708_vm3, %v2046_v20, %v2316_v54  ;;  %v2064_v16 = vrot.slane %v2063_v31, 2 }
 0x441   :  { %5905 = vst [vmem:[#allocation17_spill] sm:$0xff] %v5271_v22  ;;  %v2207_v50 = vadd.f32 %v2206_v33, %v2205_v53  ;;  %v2057_v0 = vrot.slane %v2056_v56, 2  ;;  %v2200_v2 = vadd.f32 %v2199_v5, %v2198_v36  ;;  %v2318_v62 = vsel %vm710_vm4, %v5265_v18, %v2317_v40 }
 0x442   :  { %v5281_v46 = vadd.f32 %v2189_v9, %v2188_v7  ;;  %v5284_v10 = vadd.f32 %v2064_v16, %v2063_v31  ;;  %v2075_v54 = vadd.f32 %v5267_v42, %v5261_v24  ;;  %v2143_v33 = vmul.f32 %v5267_v42, %v5267_v42 }
 0x443   :  { %v2208_v21 = vrot.slane %v2207_v50, 2  ;;  %v2058_v8 = vadd.f32 %v2057_v0, %v2056_v56  ;;  %v2201_v28 = vrot.slane %v2200_v2, 2  ;;  %v2140_v5 = vmul.f32 %v5263_v1, %v5263_v1 }
 0x444   :  { %v2068_v9 = vadd.f32 %v5271_v22, %v5263_v1  ;;  %v2141_v31 = vmul.f32 %v5271_v22, %v5271_v22  ;;  %v2076_v7 = vrot.slane %v2075_v54, 4  ;;  %v2219_v36 = vadd.f32 %v2143_v33, %v2142_v29 }
 0x445   :  { %v5290_v14 = vadd.f32 %v2208_v21, %v2207_v50  ;;  %v5298_v53 = vpop.f32.mrb[52].mxu0  ;;  %v2059_v56 = vrot.slane %v2058_v8, 1  ;;  %v2202_v25 = vadd.f32 %v2201_v28, %v2200_v2 }
 0x446   :  { %5906 = vst [vmem:[#allocation21_spill] sm:$0xff] %v5298_v53  ;;  %v5300_v20 = vpop.f32.mrb[53].mxu0  ;;  %v2069_v50 = vrot.slane %v2068_v9, 4  ;;  %v2212_v0 = vadd.f32 %v2141_v31, %v2140_v5  ;;  %v2077_v27 = vadd.f32 %v2076_v7, %v2075_v54  ;;  %v2220_v4 = vrot.slane %v2219_v36, 4 }
 0x447   :  { %5907 = vst [vmem:[#allocation24_spill] sm:$0xff] %v5300_v20  ;;  %v5304_v21 = vpop.f32.mrb[54].mxu0  ;;  %v5306_v39 = vadd.f32 %v2059_v56, %v2058_v8  ;;  %v2146_v13 = vmul.f32 %v5298_v53, %v5298_v53  ;;  %v2203_v29 = vrot.slane %v2202_v25, 1  ;;  %v2144_v8 = vmul.f32 %v5300_v20, %v5300_v20 }
 0x448   :  { %5908 = vst [vmem:[#allocation26_spill] sm:$0xff] %v5304_v21  ;;  %v5310_v28 = vpop.f32.mrb[55].mxu0  ;;  %v2070_v2 = vadd.f32 %v2069_v50, %v2068_v9  ;;  %v2213_v33 = vrot.slane %v2212_v0, 4  ;;  %v2089_v40 = vadd.f32 %v5304_v21, %v5298_v53  ;;  %v2078_v31 = vrot.slane %v2077_v27, 2 }
 0x449   :  { %5909 = vst [vmem:[#allocation23_spill] sm:$0xff] %v5310_v28  ;;  %v2319_v5 = vsel %vm712_vm5, %v5306_v39, %v2318_v62  ;;  %v2221_v16 = vadd.f32 %v2220_v4, %v2219_v36  ;;  %v2147_v55 = vmul.f32 %v5304_v21, %v5304_v21  ;;  %v2082_v50 = vadd.f32 %v5310_v28, %v5300_v20 }
 0x44a   :  { %v2071_v54 = vrot.slane %v2070_v2, 2  ;;  %v2214_v56 = vadd.f32 %v2213_v33, %v2212_v0  ;;  %v2090_v7 = vrot.slane %v2089_v40, 4  ;;  %v2079_v15 = vadd.f32 %v2078_v31, %v2077_v27 }
 0x44b   :  { %v2222_v9 = vrot.slane %v2221_v16, 2  ;;  %v2145_v43 = vmul.f32 %v5310_v28, %v5310_v28  ;;  %v2233_v36 = vadd.f32 %v2147_v55, %v2146_v13  ;;  %v2083_v33 = vrot.slane %v2082_v50, 4 }
 0x44c   :  { %v2072_v62 = vadd.f32 %v2071_v54, %v2070_v2  ;;  %v2215_v19 = vrot.slane %v2214_v56, 2  ;;  %v2091_v4 = vadd.f32 %v2090_v7, %v2089_v40  ;;  %v2080_v23 = vrot.slane %v2079_v15, 1 }
 0x44d   :  { %v5324_v6 = vpop.f32.mrb[56].mxu0  ;;  %v2223_v0 = vadd.f32 %v2222_v9, %v2221_v16  ;;  %v2226_v3 = vadd.f32 %v2145_v43, %v2144_v8  ;;  %v2234_v42 = vrot.slane %v2233_v36, 4  ;;  %v2084_v2 = vadd.f32 %v2083_v33, %v2082_v50 }
 0x44e   :  { %5910 = vst [vmem:[#allocation25_spill] sm:$0xff] %v5324_v6  ;;  %v5326_v53 = vpop.f32.mrb[57].mxu0  ;;  %v2073_v27 = vrot.slane %v2072_v62, 1  ;;  %v2216_v31 = vadd.f32 %v2215_v19, %v2214_v56  ;;  %v2092_v21 = vrot.slane %v2091_v4, 2  ;;  %v2081_v24 = vadd.f32 %v2080_v23, %v2079_v15 }
 0x44f   :  { %5911 = vst [vmem:[#allocation28_spill] sm:$0xff] %v5326_v53  ;;  %v5328_v20 = vpop.f32.mrb[58].mxu0  ;;  %v2224_v28 = vrot.slane %v2223_v0, 1  ;;  %v2227_v54 = vrot.slane %v2226_v3, 4  ;;  %v2235_v16 = vadd.f32 %v2234_v42, %v2233_v36  ;;  %v5332_v9 = vadd.f32 %v2203_v29, %v2202_v25 }
 0x450   :  { %5912 = vst [vmem:[#allocation30_spill] sm:$0xff] %v5328_v20  ;;  %v5330_v40 = vpop.f32.mrb[59].mxu0  ;;  %v2074_v55 = vadd.f32 %v2073_v27, %v2072_v62  ;;  %v2217_v13 = vrot.slane %v2216_v31, 1  ;;  %v2093_v7 = vadd.f32 %v2092_v21, %v2091_v4  ;;  %v2284_v43 = vadd.f32 %v5167_v59, %v2081_v24 }
 0x451   :  { %5913 = vst [vmem:[#allocation27_spill] sm:$0xff] %v5330_v40  ;;  %v2085_v8 = vrot.slane %v2084_v2, 2  ;;  %v2228_v19 = vadd.f32 %v2227_v54, %v2226_v3  ;;  %v5335_v56 = vadd.f32 %v2224_v28, %v2223_v0  ;;  %v2236_v33 = vrot.slane %v2235_v16, 2 }
 0x452   :  { %v2283_v22 = vadd.f32 %v5167_v59, %v2074_v55  ;;  %v2321_v23 = vsel %vm702_vm0, %v2081_v24, %v2074_v55  ;;  %v2094_v15 = vrot.slane %v2093_v7, 1  ;;  %v2434_v50 = vrot.slane %v2284_v43, 7 }
 0x453   :  { %v2086_v1 = vadd.f32 %v2085_v8, %v2084_v2  ;;  %v2229_v62 = vrot.slane %v2228_v19, 2  ;;  %v5339_v27 = vadd.f32 %v2217_v13, %v2216_v31  ;;  %v5914_v25 = vrot.slane %v5284_v10, 1 }
 0x454   :  { %v2095_v42 = vadd.f32 %v2094_v15, %v2093_v7  ;;  %v2280_v3 = vadd.f32 %v5167_v59, %v5265_v18  ;;  %v5349_v29 = vsel %vm702_vm0, %v2434_v50, %v2283_v22  ;;  %v2237_v24 = vadd.f32 %v2236_v33, %v2235_v16 }
 0x455   :  { %v2067_v21 = vadd.f32 %v5914_v25, %v5284_v10  ;;  %v5346_v28 = vpop.f32.mrb[60].mxu0  ;;  %v2087_v4 = vrot.slane %v2086_v1, 1  ;;  %v5351_v36 = vadd.f32 %v2229_v62, %v2228_v19  ;;  %v2281_v10 = vadd.f32 %v5167_v59, %v5306_v39 }
 0x456   :  { %5915 = vst [vmem:[#allocation29_spill] sm:$0xff] %v5346_v28  ;;  %v5353_v0 = vpop.f32.mrb[61].mxu0  ;;  %v5356_v31 = vadd.f32 %v5167_v59, %v2095_v42  ;;  %v2238_v22 = vrot.slane %v2237_v24, 1  ;;  %v2150_v7 = vmul.f32 %v5324_v6, %v5324_v6  ;;  %v5919_v39 = vrot.slane %v5202_v52, 7 }
 0x457   :  { %5916 = vst [vmem:[#allocation32_spill] sm:$0xff] %v5353_v0  ;;  %v2282_v2 = vadd.f32 %v5167_v59, %v2067_v21  ;;  %v2320_v18 = vsel %vm714_vm6, %v2067_v21, %v2319_v5  ;;  %v5362_v54 = vpop.f32.mrb[62].mxu0  ;;  %v2088_v55 = vadd.f32 %v2087_v4, %v2086_v1  ;;  %v2428_v19 = vrot.slane %v2280_v3, 3 }
 0x458   :  { %5917 = vst [vmem:[#allocation34_spill] sm:$0xff] %v5362_v54  ;;  %v5367_v16 = vpop.f32.mrb[63].mxu0  ;;  %v5371_v8 = vmul.f32 %v2320_v18, %v5174_v37  ;;  %v2421_v5 = vsel %vm702_vm0, %v5919_v39, %v5210_v58  ;;  %v5377_v15 = vadd.f32 %v2238_v22, %v2237_v24  ;;  %v2430_v33 = vrot.slane %v2281_v10, 2 }
 0x459   :  { %5918 = vst [vmem:[#allocation31_spill] sm:$0xff] %v5367_v16  ;;  %v5380_v1 = vadd.f32 %v5167_v59, %v2088_v55  ;;  %v2322_v50 = vsel %vm704_vm1, %v2088_v55, %v2321_v23  ;;  %v5920_v62 = vrot.slane %v5241_v51, 6  ;;  %v2432_v21 = vrot.slane %v2282_v2, 1 }
 0x45a   :  { %v2148_v4 = vmul.f32 %v5326_v53, %v5326_v53  ;;  %v2103_v52 = vadd.f32 %v5328_v20, %v5324_v6  ;;  %v5921_v3 = vrot.slane %v5230_v17, 5  ;;  %v2151_v23 = vmul.f32 %v5328_v20, %v5328_v20 }
 0x45b   :  { %v2423_v25 = vsel %vm704_vm1, %v5920_v62, %v2421_v5  ;;  %v2096_v51 = vadd.f32 %v5330_v40, %v5326_v53  ;;  %v5922_v10 = vrot.slane %v5274_v60, 4  ;;  %v2149_v22 = vmul.f32 %v5330_v40, %v5330_v40 }
 0x45c   :  { %v2425_v24 = vsel %vm706_vm2, %v5921_v3, %v2423_v25  ;;  %v2104_v18 = vrot.slane %v2103_v52, 4  ;;  %v2323_v55 = vsel %vm706_vm2, %v2095_v42, %v2322_v50  ;;  %v2247_v39 = vadd.f32 %v2151_v23, %v2150_v7 }
 0x45d   :  { %v2427_v2 = vsel %vm708_vm3, %v5922_v10, %v2425_v24  ;;  %v2097_v5 = vrot.slane %v2096_v51, 4  ;;  %v2154_v62 = vmul.f32 %v5346_v28, %v5346_v28  ;;  %v2240_v43 = vadd.f32 %v2149_v22, %v2148_v4 }
 0x45e   :  { %v2429_v17 = vsel %vm710_vm4, %v2428_v19, %v2427_v2  ;;  %v2105_v3 = vadd.f32 %v2104_v18, %v2103_v52  ;;  %v2152_v60 = vmul.f32 %v5353_v0, %v5353_v0  ;;  %v2248_v10 = vrot.slane %v2247_v39, 4 }
 0x45f   :  { %v2431_v25 = vsel %vm712_vm5, %v2430_v33, %v2429_v17  ;;  %v2098_v58 = vadd.f32 %v2097_v5, %v2096_v51  ;;  %v2117_v42 = vadd.f32 %v5362_v54, %v5346_v28  ;;  %v2241_v19 = vrot.slane %v2240_v43, 4 }
 0x460   :  { %v2433_v24 = vsel %vm714_vm6, %v2432_v21, %v2431_v25  ;;  %v2106_v7 = vrot.slane %v2105_v3, 2  ;;  %v2155_v50 = vmul.f32 %v5362_v54, %v5362_v54  ;;  %v2110_v33 = vadd.f32 %v5367_v16, %v5353_v0 }
 0x461   :  { %4094 = vmatprep.mubr.f32.mxu1 %v2433_v24  ;;  %v2249_v4 = vadd.f32 %v2248_v10, %v2247_v39  ;;  %v2099_v52 = vrot.slane %v2098_v58, 2  ;;  %v2118_v23 = vrot.slane %v2117_v42, 4  ;;  %v2153_v21 = vmul.f32 %v5367_v16, %v5367_v16 }
 0x462   :  { %v2107_v2 = vadd.f32 %v2106_v7, %v2105_v3  ;;  %v2242_v51 = vadd.f32 %v2241_v19, %v2240_v43  ;;  %v2261_v18 = vadd.f32 %v2155_v50, %v2154_v62  ;;  %v2111_v22 = vrot.slane %v2110_v33, 4 }
 0x463   :  { %v2250_v17 = vrot.slane %v2249_v4, 2  ;;  %v2100_v5 = vadd.f32 %v2099_v52, %v2098_v58  ;;  %v2119_v25 = vadd.f32 %v2118_v23, %v2117_v42  ;;  %v2254_v24 = vadd.f32 %v2153_v21, %v2152_v60 }
 0x464   :  { %v2108_v13 = vrot.slane %v2107_v2, 1  ;;  %v2243_v28 = vrot.slane %v2242_v51, 2  ;;  %v2262_v54 = vrot.slane %v2261_v18, 4  ;;  %v2112_v20 = vadd.f32 %v2111_v22, %v2110_v33 }
 0x465   :  { %v2251_v6 = vadd.f32 %v2250_v17, %v2249_v4  ;;  %v2101_v0 = vrot.slane %v2100_v5, 1  ;;  %v2120_v39 = vrot.slane %v2119_v25, 2  ;;  %v2255_v10 = vrot.slane %v2254_v24, 4 }
 0x466   :  { %v2109_v40 = vadd.f32 %v2108_v13, %v2107_v2  ;;  %v2244_v53 = vadd.f32 %v2243_v28, %v2242_v51  ;;  %v2263_v49 = vadd.f32 %v2262_v54, %v2261_v18  ;;  %v2113_v16 = vrot.slane %v2112_v20, 2 }
 0x467   :  { %v2252_v3 = vrot.slane %v2251_v6, 1  ;;  %v2102_v43 = vadd.f32 %v2101_v0, %v2100_v5  ;;  %v2121_v62 = vadd.f32 %v2120_v39, %v2119_v25  ;;  %v2256_v7 = vadd.f32 %v2255_v10, %v2254_v24 }
 0x468   :  { %v2288_v58 = vadd.f32 %v5167_v59, %v2109_v40  ;;  %v2245_v42 = vrot.slane %v2244_v53, 1  ;;  %v2264_v60 = vrot.slane %v2263_v49, 2  ;;  %v2114_v19 = vadd.f32 %v2113_v16, %v2112_v20 }
 0x469   :  { %v5923_v50 = vrot.slane %v5351_v36, 1  ;;  %v2287_v4 = vadd.f32 %v5167_v59, %v2102_v43  ;;  %v2324_v28 = vsel %vm708_vm3, %v2102_v43, %v2323_v55  ;;  %v2122_v54 = vrot.slane %v2121_v62, 1 }
 0x46a   :  { %v5427_v13 = vadd.f32 %v2252_v3, %v2251_v6  ;;  %v2442_v0 = vrot.slane %v2288_v58, 3  ;;  %v2265_v52 = vadd.f32 %v2264_v60, %v2263_v49  ;;  %v2115_v23 = vrot.slane %v2114_v19, 1 }
 0x46b   :  { %v5423_v33 = vadd.f32 %v5923_v50, %v5351_v36  ;;  %v2440_v21 = vrot.slane %v2287_v4, 4  ;;  %v2123_v2 = vadd.f32 %v2122_v54, %v2121_v62  ;;  %v2257_v51 = vrot.slane %v2256_v7, 2 }
 0x46c   :  { %v2325_v20 = vsel %vm710_vm4, %v2109_v40, %v2324_v28  ;;  %v5430_v16 = vadd.f32 %v2245_v42, %v2244_v53  ;;  %v2266_v18 = vrot.slane %v2265_v52, 1  ;;  %v2116_v36 = vadd.f32 %v2115_v23, %v2114_v19 }
 0x46d   :  { %v5924_v22 = vrot.slane %v5380_v1, 6  ;;  %v2258_v17 = vadd.f32 %v2257_v51, %v2256_v7  ;;  %v2290_v6 = vadd.f32 %v5167_v59, %v2123_v2  ;;  %v5925_v49 = vrot.slane %v5356_v31, 5 }
 0x46e   :  { %v5926_v25 = vrot.slane %v5290_v14, 1  ;;  %v2289_v53 = vadd.f32 %v5167_v59, %v2116_v36  ;;  %v2326_v24 = vsel %vm712_vm5, %v2116_v36, %v2325_v20  ;;  %v2334_v1 = vrot.slane %v5371_v8, 1 }
 0x46f   :  { %v2437_v55 = vsel %vm704_vm1, %v5924_v22, %v5349_v29  ;;  %v2259_v29 = vrot.slane %v2258_v17, 1  ;;  %v2327_v10 = vsel %vm714_vm6, %v2123_v2, %v2326_v24  ;;  %v2446_v31 = vrot.slane %v2290_v6, 1 }
 0x470   :  { %v2439_v5 = vsel %vm706_vm2, %v5925_v49, %v2437_v55  ;;  %v2211_v40 = vadd.f32 %v5926_v25, %v5290_v14  ;;  %v2331_v43 = vmul.f32 %v2327_v10, %v5174_v37  ;;  %v2444_v62 = vrot.slane %v2289_v53, 2 }
 0x471   :  { %v2441_v39 = vsel %vm708_vm3, %v2440_v21, %v2439_v5  ;;  %v2335_v7 = vrot.slane %v5371_v8, 2  ;;  %v2336_v14 = vrot.slane %v5371_v8, 3  ;;  %v2260_v59 = vadd.f32 %v2259_v29, %v2258_v17 }
 0x472   :  { %v2443_v3 = vsel %vm710_vm4, %v2442_v0, %v2441_v39  ;;  %v2337_v58 = vrot.slane %v5371_v8, 4  ;;  %v2338_v42 = vrot.slane %v5371_v8, 5  ;;  %v2339_v60 = vrot.slane %v5371_v8, 6 }
 0x473   :  { %v2346_v19 = vrot.slane %v2331_v43, 6  ;;  %v2445_v50 = vsel %vm712_vm5, %v2444_v62, %v2443_v3  ;;  %v2340_v4 = vrot.slane %v5371_v8, 7  ;;  %v2364_v37 = vadd.f32 %v5371_v8, %v5204_v48 }
 0x474   :  { %v2447_v28 = vsel %vm714_vm6, %v2446_v31, %v2445_v50  ;;  %v2365_v54 = vadd.f32 %v2334_v1, %v5194_v45  ;;  %v2366_v0 = vadd.f32 %v2335_v7, %v5245_v12  ;;  %v2367_v23 = vadd.f32 %v2336_v14, %v5234_v57 }
 0x475   :  { %v2378_v21 = vadd.f32 %v2346_v19, %v2260_v59  ;;  %4095 = vmatmul.mubr.f32.vlgmr.msra.gmra.mrb[8].mxu1 %v2447_v28  ;;  %v2368_v2 = vadd.f32 %v2337_v58, %v5281_v46  ;;  %v2369_v51 = vadd.f32 %v2338_v42, %v5277_v11  ;;  %v2370_v20 = vadd.f32 %v2339_v60, %v5332_v9 }
 0x476   :  { %v2267_v36 = vadd.f32 %v2266_v18, %v2265_v52  ;;  %4241 = vmatpush3.bf16.msra.mxu1 %v4433_v26  ;;  %v2371_v48 = vadd.f32 %v2340_v4, %v2211_v40  ;;  %v2389_v8 = vadd.f32 %v5199_v34, %v2365_v54  ;;  %v2390_v45 = vadd.f32 %v5199_v34, %v2366_v0 }
 0x477   :  { %v2391_v12 = vadd.f32 %v5199_v34, %v2367_v23  ;;  %v2392_v57 = vadd.f32 %v5199_v34, %v2368_v2  ;;  %v2393_v22 = vadd.f32 %v5199_v34, %v2369_v51  ;;  %v2394_v46 = vadd.f32 %v5199_v34, %v2370_v20  ;;  %4243 = vmatprep.subr.bf16.mxu1 %v4446_v30 }
 0x478   :  { %v2388_v11 = vadd.f32 %v5199_v34, %v2364_v37  ;;  %v2543_v9 = vrot.slane %v2389_v8, 7  ;;  %v2545_v52 = vrot.slane %v2390_v45, 6  ;;  %v2341_v26 = vrot.slane %v2331_v43, 1 }
 0x479   :  { %v2395_v18 = vadd.f32 %v5199_v34, %v2371_v48  ;;  %v2547_v55 = vrot.slane %v2391_v12, 5  ;;  %v2549_v17 = vrot.slane %v2392_v57, 4  ;;  %v2551_v6 = vrot.slane %v2393_v22, 3 }
 0x47a   :  { %v2544_v49 = vsel %vm702_vm0, %v2543_v9, %v2388_v11  ;;  %v2553_v5 = vrot.slane %v2394_v46, 2  ;;  %4245 = vmatpush3.bf16.msra.mxu1 %v4446_v30  ;;  %v2342_v25 = vrot.slane %v2331_v43, 2  ;;  %v2343_v40 = vrot.slane %v2331_v43, 3 }
 0x47b   :  { %v2546_v53 = vsel %vm704_vm1, %v2545_v52, %v2544_v49  ;;  %4247 = vmatprep.subr.bf16.mxu1 %v4451_v32  ;;  %v2344_v24 = vrot.slane %v2331_v43, 4  ;;  %v2345_v39 = vrot.slane %v2331_v43, 5  ;;  %v2347_v1 = vrot.slane %v2331_v43, 7 }
 0x47c   :  { %v2548_v29 = vsel %vm706_vm2, %v2547_v55, %v2546_v53  ;;  %v2372_v10 = vadd.f32 %v2331_v43, %v5339_v27  ;;  %v2373_v3 = vadd.f32 %v2341_v26, %v5335_v56  ;;  %v2374_v31 = vadd.f32 %v2342_v25, %v5423_v33 }
 0x47d   :  { %v2550_v62 = vsel %vm708_vm3, %v2549_v17, %v2548_v29  ;;  %v2375_v30 = vadd.f32 %v2343_v40, %v5377_v15  ;;  %v2376_v7 = vadd.f32 %v2344_v24, %v5430_v16  ;;  %v2377_v14 = vadd.f32 %v2345_v39, %v5427_v13  ;;  %v3593_v40 = vld [vmem:[%s5739_s3 + $0x1] ss:$0 sm:$0xff] }
 0x47e   :  { %v2552_v59 = vsel %vm710_vm4, %v2551_v6, %v2550_v62  ;;  %v2555_v58 = vrot.slane %v2395_v18, 1  ;;  %4249 = vmatpush3.bf16.msra.mxu1 %v4451_v32  ;;  %v2379_v42 = vadd.f32 %v2347_v1, %v2267_v36  ;;  %v2397_v27 = vadd.f32 %v5199_v34, %v2373_v3 }
 0x47f   :  { %v2554_v56 = vsel %vm712_vm5, %v2553_v5, %v2552_v59  ;;  %4251 = vmatprep.subr.bf16.mxu1 %v4462_v35  ;;  %v2398_v33 = vadd.f32 %v5199_v34, %v2374_v31  ;;  %v2399_v15 = vadd.f32 %v5199_v34, %v2375_v30  ;;  %v2400_v13 = vadd.f32 %v5199_v34, %v2376_v7  ;;  %v5927_v30 = vld [vmem:[#allocation35_spill] sm:$0xff] }
 0x480   :  { %v2556_v16 = vsel %vm714_vm6, %v2555_v58, %v2554_v56  ;;  %v2396_v43 = vadd.f32 %v5199_v34, %v2372_v10  ;;  %v2401_v32 = vadd.f32 %v5199_v34, %v2377_v14  ;;  %v2557_v60 = vrot.slane %v2397_v27, 7  ;;  %v3594_v10 = vld [vmem:[%s5740_s4 + $0x1] ss:$0 sm:$0xff] }
 0x481   :  { %4129 = vmatprep.mubr.f32.mxu1 %v2556_v16  ;;  %v2559_v19 = vrot.slane %v2398_v33, 6  ;;  %v2402_v50 = vadd.f32 %v5199_v34, %v2378_v21  ;;  %v2403_v4 = vadd.f32 %v5199_v34, %v2379_v42  ;;  %v2561_v28 = vrot.slane %v2399_v15, 5 }
 0x482   :  { %4253 = vmatpush3.bf16.msra.mxu1 %v4462_v35  ;;  %v2558_v37 = vsel %vm702_vm0, %v2557_v60, %v2396_v43  ;;  %v2563_v0 = vrot.slane %v2400_v13, 4  ;;  %v2565_v2 = vrot.slane %v2401_v32, 3  ;;  %v2834_v25 = vrot.slane %v5144_v61, %v5853_v63 }
 0x483   :  { %4255 = vmatprep.subr.bf16.mxu1 %v4472_v38  ;;  %v2560_v54 = vsel %vm704_vm1, %v2559_v19, %v2558_v37  ;;  %v2567_v35 = vrot.slane %v2402_v50, 2  ;;  %v2569_v20 = vrot.slane %v2403_v4, 1 }
 0x484   :  { %v2562_v23 = vsel %vm706_vm2, %v2561_v28, %v2560_v54 }
 0x485   :  { %v2564_v51 = vsel %vm708_vm3, %v2563_v0, %v2562_v23 }
 0x486   :  { %4257 = vmatpush3.bf16.msra.mxu1 %v4472_v38  ;;  %v2566_v21 = vsel %vm710_vm4, %v2565_v2, %v2564_v51  ;;  %v4312_v38 = vld [vmem:[%s5738_s6] sm:$0xff] }
 0x487   :  { %4259 = vmatprep.subr.bf16.mxu1 %v4482_v41  ;;  %v2568_v34 = vsel %vm712_vm5, %v2567_v35, %v2566_v21  ;;  %v5928_v21 = vld [vmem:[#allocation19_spill] sm:$0xff] }
 0x488   :  { %v2570_v36 = vsel %vm714_vm6, %v2569_v20, %v2568_v34  ;;  %v5929_v34 = vld [vmem:[#allocation17_spill] sm:$0xff] }
 0x48a   :  { %4261 = vmatpush3.bf16.msra.mxu1 %v4482_v41 }
 0x48b   :  { %4263 = vmatprep.subr.bf16.mxu1 %v4492_v44 }
 0x48e   :  { %4265 = vmatpush3.bf16.msra.mxu1 %v4492_v44 }
 0x48f   :  { %4267 = vmatprep.subr.bf16.mxu1 %v4502_v47 }
 0x492   :  { %4269 = vmatpush3.bf16.msra.mxu1 %v4502_v47 }
 0x493   :  { %4132 = vmatprep.subr.mxu1 %v4312_v38 }
 0x495   :  { %4130 = vmatmul.mubr.f32.vlgmr.msra.gmra.mrb[10].mxu1 %v2570_v36 }
 0x496   :  { %4133 = vmatpush3.msra.mxu1 %v4312_v38 }
 0x497   :  { %4137 = vmatprep.subr.mxu1 %v4312_v38 }
 0x548   :  { %v4096_v48 = vpop.f32.mrb[8].mxu1 }
 0x549   :  { %v2516_v8 = vpop.f32.mrb[9].mxu1  ;;  %v2526_v41 = vmul.f32 0.00390625, %v4096_v48 }
 0x54a   :  { %v2525_v45 = vmul.f32 0.00390625, %v2516_v8 }
 0x54b   :  { %v2651_v12 = vmul.f32 %v2526_v41, %v2526_v41 }
 0x54c   :  { %4134 = vmatprep.mubr.msk.f32.mxu1 %vm1055_vm7, %v2525_v45  ;;  %v2650_v22 = vmul.f32 %v2525_v45, %v2525_v45 }
 0x54d   :  { %4135 = vmatmul.mubr.msk.f32.vlgmr.msra.gmra.mrb[12].mxu1 %vm1055_vm7, %v2526_v41  ;;  %v5930_v41 = vld [vmem:[#allocation18_spill] sm:$0xff] }
 0x54e   :  { %4138 = vmatpush3.msra.mxu1 %v4312_v38 }
 0x568   :  { %v4131_v44 = vpop.f32.mrb[10].mxu1 }
 0x569   :  { %v2649_v47 = vmul.f32 0.00390625, %v4131_v44  ;;  %v2639_v57 = vpop.f32.mrb[11].mxu1 }
 0x56a   :  { %v2648_v46 = vmul.f32 0.00390625, %v2639_v57  ;;  %v5932_v57 = vld [vmem:[#allocation24_spill] sm:$0xff] }
 0x56b   :  { %v2653_v11 = vsub.f32 %v2649_v47, %v2651_v12  ;;  %v5931_v12 = vld [vmem:[#allocation15_spill] sm:$0xff] }
 0x56c   :  { %v2652_v9 = vsub.f32 %v2648_v46, %v2650_v22  ;;  %v5933_v46 = vld [vmem:[#allocation23_spill] sm:$0xff] }
 0x56d   :  { %v2655_v52 = vmax.f32 %v2653_v11, 0.0 }
 0x56e   :  { %v2654_v26 = vmax.f32 %v2652_v9, 0.0 }
 0x56f   :  { %v2657_v18 = vadd.f32 1e-05, %v2655_v52  ;;  %v5934_v52 = vld [vmem:[#allocation21_spill] sm:$0xff] }
 0x570   :  { %v2656_v55 = vadd.f32 1e-05, %v2654_v26 }
 0x572   :  { %4307 = vrsqrt.f32 %v2656_v55 }
 0x573   :  { %4309 = vrsqrt.f32 %v2657_v18  ;;  %v5935_v18 = vld [vmem:[#allocation26_spill] sm:$0xff] }
 0x57c   :  { %v4308_v17 = vpop.eup %4307 }
 0x57d   :  { %v4310_v6 = vpop.eup %4309  ;;  %4139 = vmatprep.mubr.msk.f32.mxu1 %vm1055_vm7, %v4308_v17  ;;  %v5936_v17 = vld [vmem:[#allocation28_spill] sm:$0xff] }
 0x57e   :  { %4140 = vmatmul.mubr.msk.f32.vlgmr.msra.gmra.mrb[14].mxu1 %vm1055_vm7, %v4310_v6 }
 0x620   :  { %v4136_v49 = vpop.f32.mrb[12].mxu1 }
 0x621   :  { %v2732_v5 = vpop.f32.mrb[13].mxu1  ;;  %v2837_v24 = vsub.f32 %v2834_v25, %v4136_v49  ;;  %v5937_v49 = vld [vmem:[#allocation27_spill] sm:$0xff] }
 0x622   :  { %v2836_v29 = vsub.f32 %v2834_v25, %v2732_v5  ;;  %v5938_v25 = vld [vmem:[#allocation25_spill] sm:$0xff] }
 0x651   :  { %v4141_v53 = vpop.f32.mrb[14].mxu1 }
 0x652   :  { %v2829_v39 = vmul.f32 %v4141_v53, %v3593_v40  ;;  %v2813_v1 = vpop.f32.mrb[15].mxu1  ;;  %v5939_v53 = vld [vmem:[#allocation30_spill] sm:$0xff] }
 0x653   :  { %v2828_v3 = vmul.f32 %v3593_v40, %v2813_v1 }
 0x654   :  { %v2839_v31 = vmul.f32 %v2837_v24, %v2829_v39  ;;  %v2899_v62 = vcombine.high %v2829_v39, %v2829_v39  ;;  %v2906_v7 = vrot.slane %v2829_v39, %v5927_v30  ;;  %v5940_v39 = vld [vmem:[#allocation32_spill] sm:$0xff] }
 0x655   :  { %v2838_v14 = vmul.f32 %v2836_v29, %v2828_v3  ;;  %v2850_v61 = vcombine.high %v2828_v3, %v2828_v3  ;;  %v2857_v59 = vrot.slane %v2828_v3, %v5927_v30  ;;  %v5941_v29 = vld [vmem:[#allocation31_spill] sm:$0xff]  ;;  %v5942_v3 = vld [vmem:[#allocation29_spill] sm:$0xff] }
 0x656   :  { %v2847_v58 = vadd.f32 %v3594_v10, %v2839_v31  ;;  %v2913_v42 = vrot.slane %v2899_v62, %v5927_v30  ;;  %v2914_v27 = vcombine.high %v2906_v7, %v2906_v7  ;;  %v2922_v56 = vrot.slane %v2906_v7, %v5927_v30  ;;  %v5943_v62 = vld [vmem:[#allocation34_spill] sm:$0xff] }
 0x657   :  { %v5536_v33 = vadd.f32 %v3594_v10, %v2838_v14  ;;  %v2864_v15 = vrot.slane %v2850_v61, %v5927_v30  ;;  %v2865_v16 = vcombine.high %v2857_v59, %v2857_v59  ;;  %v5540_v13 = vrot.slane %v2857_v59, %v5927_v30 }
 0x658   :  { %v2915_v43 = vcombine.high %v2913_v42, %v2913_v42  ;;  %v2929_v32 = vrot.slane %v2913_v42, %v5927_v30  ;;  %v2936_v60 = vrot.slane %v2914_v27, %v5927_v30  ;;  %v2944_v19 = vcombine.high %v2922_v56, %v2922_v56 }
 0x659   :  { %v2983_v50 = vrot.slane %v2922_v56, %v5853_v63  ;;  %v3111_v4 = vcombine.high %v2847_v58, %v2847_v58  ;;  %v3118_v37 = vrot.slane %v2847_v58, %v5927_v30  ;;  %v2866_v28 = vcombine.high %v2864_v15, %v2864_v15 }
 0x65a   :  { %v2943_v54 = vrot.slane %v2915_v43, %v5927_v30  ;;  %v2945_v0 = vcombine.high %v2929_v32, %v2929_v32  ;;  %v2946_v23 = vcombine.high %v2936_v60, %v2936_v60  ;;  %v2987_v2 = vrot.slane %v2936_v60, %v5853_v63 }
 0x65b   :  { %v2991_v51 = vrot.slane %v2944_v19, %v5853_v63  ;;  %v2999_v35 = vrot.slane %v2929_v32, %v5853_v63  ;;  %v3044_v20 = vmul.f32 %v2983_v50, %v5928_v21  ;;  %v3045_v36 = vmul.f32 %v2983_v50, %v5929_v34 }
 0x65c   :  { %v2947_v38 = vcombine.high %v2943_v54, %v2943_v54  ;;  %v2995_v48 = vrot.slane %v2946_v23, %v5853_v63  ;;  %v3003_v8 = vrot.slane %v2943_v54, %v5853_v63  ;;  %v3007_v45 = vrot.slane %v2945_v0, %v5853_v63 }
 0x65d   :  { %v3046_v44 = vmul.f32 %v5930_v41, %v2987_v2  ;;  %v3047_v47 = vmul.f32 %v5931_v12, %v2987_v2  ;;  %v3048_v22 = vmul.f32 %v2991_v51, %v5932_v57  ;;  %v3049_v11 = vmul.f32 %v2991_v51, %v5933_v46 }
 0x65e   :  { %v3011_v9 = vrot.slane %v2947_v38, %v5853_v63  ;;  %v3050_v26 = vmul.f32 %v5934_v52, %v2995_v48  ;;  %v3051_v55 = vmul.f32 %v5935_v18, %v2995_v48  ;;  %v3052_v6 = vmul.f32 %v2999_v35, %v5936_v17 }
 0x65f   :  { %v3053_v5 = vmul.f32 %v2999_v35, %v5937_v49  ;;  %v3054_v40 = vmul.f32 %v5938_v25, %v3003_v8  ;;  %v3055_v24 = vmul.f32 %v5939_v53, %v3003_v8  ;;  %v3056_v1 = vmul.f32 %v3007_v45, %v5940_v39 }
 0x660   :  { %v3057_v10 = vmul.f32 %v3007_v45, %v5941_v29  ;;  %v3058_v31 = vmul.f32 %v5942_v3, %v3011_v9  ;;  %v3059_v7 = vmul.f32 %v5943_v62, %v3011_v9  ;;  %v3125_v14 = vrot.slane %v3111_v4, %v5927_v30 }
 0x661   :  { %v3126_v61 = vcombine.high %v3118_v37, %v3118_v37  ;;  %v3134_v59 = vrot.slane %v3118_v37, %v5927_v30  ;;  %v5573_v58 = vrot.slane %v2864_v15, %v5927_v30  ;;  %v5576_v42 = vrot.slane %v2865_v16, %v5927_v30 }
 0x662   :  { %v3127_v27 = vcombine.high %v3125_v14, %v3125_v14  ;;  %v3141_v56 = vrot.slane %v3125_v14, %v5927_v30  ;;  %v5580_v43 = vrot.slane %v2866_v28, %v5927_v30  ;;  %v2895_v32 = vcombine.high %v5540_v13, %v5540_v13 }
 0x663   :  { %v3148_v60 = vrot.slane %v3126_v61, %v5927_v30  ;;  %v3156_v19 = vcombine.high %v3134_v59, %v3134_v59  ;;  %v3195_v50 = vrot.slane %v3134_v59, %v5853_v63  ;;  %v2896_v15 = vcombine.high %v5573_v58, %v5573_v58 }
 0x664   :  { %v3155_v16 = vrot.slane %v3127_v27, %v5927_v30  ;;  %v3157_v4 = vcombine.high %v3141_v56, %v3141_v56  ;;  %v3211_v37 = vrot.slane %v3141_v56, %v5853_v63  ;;  %v2897_v28 = vcombine.high %v5576_v42, %v5576_v42 }
 0x665   :  { %v3158_v54 = vcombine.high %v3148_v60, %v3148_v60  ;;  %v3199_v0 = vrot.slane %v3148_v60, %v5853_v63  ;;  %v3203_v23 = vrot.slane %v3156_v19, %v5853_v63  ;;  %v3256_v2 = vadd.f32 %v3195_v50, %v3044_v20 }
 0x666   :  { %v3159_v51 = vcombine.high %v3155_v16, %v3155_v16  ;;  %v3215_v35 = vrot.slane %v3155_v16, %v5853_v63  ;;  %v3219_v21 = vrot.slane %v3157_v4, %v5853_v63  ;;  %v3257_v34 = vadd.f32 %v3195_v50, %v3045_v36 }
 0x667   :  { %v3207_v38 = vrot.slane %v3158_v54, %v5853_v63  ;;  %v3258_v48 = vadd.f32 %v3199_v0, %v3046_v44  ;;  %v3259_v8 = vadd.f32 %v3199_v0, %v3047_v47  ;;  %v3260_v45 = vadd.f32 %v3203_v23, %v3048_v22 }
 0x668   :  { %v3223_v41 = vrot.slane %v3159_v51, %v5853_v63  ;;  %v3261_v12 = vadd.f32 %v3203_v23, %v3049_v11  ;;  %v3264_v57 = vadd.f32 %v3211_v37, %v3052_v6  ;;  %v3265_v46 = vadd.f32 %v3211_v37, %v3053_v5 }
 0x669   :  { %v3262_v9 = vadd.f32 %v3207_v38, %v3050_v26  ;;  %v3263_v52 = vadd.f32 %v3207_v38, %v3051_v55  ;;  %v3266_v18 = vadd.f32 %v3215_v35, %v3054_v40  ;;  %v3267_v20 = vadd.f32 %v3215_v35, %v3055_v24 }
 0x66a   :  { %v3268_v17 = vadd.f32 %v3219_v21, %v3056_v1  ;;  %v3269_v49 = vadd.f32 %v3219_v21, %v3057_v10  ;;  %v3270_v25 = vadd.f32 %v3223_v41, %v3058_v31  ;;  %v3271_v53 = vadd.f32 %v3223_v41, %v3059_v7 }
 0x66b   :  { %vm3288_vm0 = vcmp.gt.f32.partialorder %v3256_v2, 0.0  ;;  %vm3289_vm1 = vcmp.gt.f32.partialorder %v3257_v34, 0.0  ;;  %vm3290_vm2 = vcmp.gt.f32.partialorder %v3258_v48, 0.0  ;;  %vm3291_vm3 = vcmp.gt.f32.partialorder %v3259_v8, 0.0 }
 0x66c   :  { %vm3292_vm4 = vcmp.gt.f32.partialorder %v3260_v45, 0.0  ;;  %vm3293_vm5 = vcmp.gt.f32.partialorder %v3261_v12, 0.0  ;;  %vm3294_vm6 = vcmp.gt.f32.partialorder %v3262_v9, 0.0  ;;  %vm3295_vm7 = vcmp.gt.f32.partialorder %v3263_v52, 0.0 }
 0x66d   :  { %vm3296_vm8 = vcmp.gt.f32.partialorder %v3264_v57, 0.0  ;;  %vm3297_vm9 = vcmp.gt.f32.partialorder %v3265_v46, 0.0  ;;  %vm3298_vm10 = vcmp.gt.f32.partialorder %v3266_v18, 0.0  ;;  %vm3299_vm11 = vcmp.gt.f32.partialorder %v3267_v20, 0.0 }
 0x66e   :  { %vm3300_vm12 = vcmp.gt.f32.partialorder %v3268_v17, 0.0  ;;  %vm3301_vm13 = vcmp.gt.f32.partialorder %v3269_v49, 0.0  ;;  %vm3302_vm14 = vcmp.gt.f32.partialorder %v3270_v25, 0.0  ;;  %vm3303_vm15 = vcmp.gt.f32.partialorder %v3271_v53, 0.0 }
 0x66f   :  { %v3320_v36 = vmul.f32 0.1, %v3256_v2  ;;  %v3321_v44 = vmul.f32 0.1, %v3257_v34  ;;  %v3322_v47 = vmul.f32 0.1, %v3258_v48  ;;  %v2898_v22 = vcombine.high %v5580_v43, %v5580_v43 }
 0x670   :  { %v3323_v11 = vmul.f32 0.1, %v3259_v8  ;;  %v3324_v26 = vmul.f32 0.1, %v3260_v45  ;;  %v3325_v55 = vmul.f32 0.1, %v3261_v12  ;;  %v2951_v6 = vrot.slane %v5540_v13, %v5853_v63 }
 0x671   :  { %v3326_v5 = vmul.f32 0.1, %v3262_v9  ;;  %v3327_v40 = vmul.f32 0.1, %v3263_v52  ;;  %v3328_v24 = vmul.f32 0.1, %v3264_v57  ;;  %v3352_v39 = vsel %vm3288_vm0, %v3256_v2, %v3320_v36 }
 0x672   :  { %v3329_v1 = vmul.f32 0.1, %v3265_v46  ;;  %v3330_v29 = vmul.f32 0.1, %v3266_v18  ;;  %v3331_v10 = vmul.f32 0.1, %v3267_v20  ;;  %v3353_v3 = vsel %vm3289_vm1, %v3257_v34, %v3321_v44 }
 0x673   :  { %v3332_v31 = vmul.f32 0.1, %v3268_v17  ;;  %v3333_v62 = vmul.f32 0.1, %v3269_v49  ;;  %v3334_v7 = vmul.f32 0.1, %v3270_v25  ;;  %v3354_v14 = vsel %vm3290_vm2, %v3258_v48, %v3322_v47 }
 0x674   :  { %v3335_v61 = vmul.f32 0.1, %v3271_v53  ;;  %v3355_v59 = vsel %vm3291_vm3, %v3259_v8, %v3323_v11  ;;  %v3356_v27 = vsel %vm3292_vm4, %v3260_v45, %v3324_v26  ;;  %v3357_v56 = vsel %vm3293_vm5, %v3261_v12, %v3325_v55  ;;  %v5950_v36 = vld [vmem:[#allocation5_spill] sm:$0xff]  ;;  %v5951_v47 = vld [vmem:[#allocation4_spill] sm:$0xff]  ;;  %v5952_v26 = vld [vmem:[#allocation7_spill] sm:$0xff] }
 0x675   :  { %v3358_v60 = vsel %vm3294_vm6, %v3262_v9, %v3326_v5  ;;  %v3359_v19 = vsel %vm3295_vm7, %v3263_v52, %v3327_v40  ;;  %v3360_v50 = vsel %vm3296_vm8, %v3264_v57, %v3328_v24  ;;  %v3361_v16 = vsel %vm3297_vm9, %v3265_v46, %v3329_v1  ;;  %v5945_v52 = vld [vmem:[#allocation3_spill] sm:$0xff]  ;;  %v5953_v5 = vld [vmem:[#allocation12_spill] sm:$0xff]  ;;  %v5954_v40 = vld [vmem:[#allocation10_spill] sm:$0xff] }
 0x676   :  { %v3362_v4 = vsel %vm3298_vm10, %v3266_v18, %v3330_v29  ;;  %v3363_v37 = vsel %vm3299_vm11, %v3267_v20, %v3331_v10  ;;  %v3364_v54 = vsel %vm3300_vm12, %v3268_v17, %v3332_v31  ;;  %v3365_v0 = vsel %vm3301_vm13, %v3269_v49, %v3333_v62  ;;  %v5947_v17 = vld [vmem:[#allocation22_spill] sm:$0xff]  ;;  %v5956_v1 = vld [vmem:[#allocation11_spill] sm:$0xff]  ;;  %v5957_v10 = vld [vmem:[#allocation16_spill] sm:$0xff] }
 0x677   :  { %v3366_v23 = vsel %vm3302_vm14, %v3270_v25, %v3334_v7  ;;  %v3367_v2 = vsel %vm3303_vm15, %v3271_v53, %v3335_v61  ;;  %v3702_v51 = vpack.c.bf16 %v3353_v3, %v3352_v39  ;;  %v3707_v35 = vpack.c.bf16 %v3355_v59, %v3354_v14  ;;  %v5949_v25 = vld [vmem:[#allocation8_spill] sm:$0xff]  ;;  %v5955_v39 = vld [vmem:[#allocation9_spill] sm:$0xff]  ;;  %v5958_v31 = vld [vmem:[#allocation14_spill] sm:$0xff] }
 0x678   :  { %v3712_v21 = vpack.c.bf16 %v3357_v56, %v3356_v27  ;;  %v3717_v34 = vpack.c.bf16 %v3359_v19, %v3358_v60  ;;  %v3722_v38 = vpack.c.bf16 %v3361_v16, %v3360_v50  ;;  %v3727_v48 = vpack.c.bf16 %v3363_v37, %v3362_v4  ;;  %v5959_v7 = vld [vmem:[#allocation13_spill] sm:$0xff] }
 0x679   :  { %3746 = vst [vmem:[%s5741_s7 + $0x40] sm:$0xff] %v3702_v51   ;;  %3747 = vst [vmem:[%s5741_s7 + $0x48] sm:$0xff] %v3707_v35   ;;  %v3732_v8 = vpack.c.bf16 %v3365_v0, %v3364_v54  ;;  %v3737_v45 = vpack.c.bf16 %v3367_v2, %v3366_v23  ;;  %v2955_v41 = vrot.slane %v5576_v42, %v5853_v63 }
 0x67a   :  { %v2959_v12 = vrot.slane %v2895_v32, %v5853_v63  ;;  %3748 = vst [vmem:[%s5741_s7 + $0x50] sm:$0xff] %v3712_v21   ;;  %3749 = vst [vmem:[%s5741_s7 + $0x58] sm:$0xff] %v3717_v34   ;;  %v2963_v13 = vrot.slane %v2897_v28, %v5853_v63  ;;  %v2967_v32 = vrot.slane %v5573_v58, %v5853_v63  ;;  %v5944_v28 = vld [vmem:[#allocation20_spill] sm:$0xff]  ;;  %v5948_v58 = vld [vmem:[#allocation2_spill] sm:$0xff] }
 0x67b   :  { %3750 = vst [vmem:[%s5741_s7 + $0x60] sm:$0xff] %v3722_v38   ;;  %3751 = vst [vmem:[%s5741_s7 + $0x68] sm:$0xff] %v3727_v48   ;;  %v2971_v57 = vrot.slane %v5580_v43, %v5853_v63  ;;  %v2975_v46 = vrot.slane %v2896_v15, %v5853_v63  ;;  %v2979_v42 = vrot.slane %v2898_v22, %v5853_v63  ;;  %v5946_v43 = vld [vmem:[#allocation6_spill] sm:$0xff] }
 0x67c   :  { %3752 = vst [vmem:[%s5741_s7 + $0x70] sm:$0xff] %v3732_v8   ;;  %3753 = vst [vmem:[%s5741_s7 + $0x78] sm:$0xff] %v3737_v45   ;;  %v3028_v9 = vmul.f32 %v2951_v6, %v5944_v28  ;;  %v3029_v18 = vmul.f32 %v2951_v6, %v5945_v52  ;;  %v3030_v20 = vmul.f32 %v5946_v43, %v2955_v41 }
 0x67d   :  { %v3031_v49 = vmul.f32 %v5947_v17, %v2955_v41  ;;  %v3032_v15 = vmul.f32 %v2959_v12, %v5948_v58  ;;  %v3033_v53 = vmul.f32 %v2959_v12, %v5949_v25  ;;  %v3034_v44 = vmul.f32 %v5950_v36, %v2963_v13 }
 0x67e   :  { %v3035_v11 = vmul.f32 %v5951_v47, %v2963_v13  ;;  %v3036_v55 = vmul.f32 %v2967_v32, %v5952_v26  ;;  %v3037_v22 = vmul.f32 %v2967_v32, %v5953_v5  ;;  %v3038_v24 = vmul.f32 %v5954_v40, %v2971_v57 }
 0x67f   :  { %v3039_v6 = vmul.f32 %v5955_v39, %v2971_v57  ;;  %v3040_v29 = vmul.f32 %v2975_v46, %v5956_v1  ;;  %v3041_v3 = vmul.f32 %v2975_v46, %v5957_v10  ;;  %v3042_v62 = vmul.f32 %v5958_v31, %v2979_v42 }
 0x680   :  { %v3043_v14 = vmul.f32 %v5959_v7, %v2979_v42  ;;  %v3062_v61 = vcombine.high %v5536_v33, %v5536_v33  ;;  %v3069_v59 = vrot.slane %v5536_v33, %v5927_v30 }
 0x682   :  { %v3076_v27 = vrot.slane %v3062_v61, %v5927_v30  ;;  %v3077_v56 = vcombine.high %v3069_v59, %v3069_v59  ;;  %v3085_v60 = vrot.slane %v3069_v59, %v5927_v30 }
 0x684   :  { %v3078_v19 = vcombine.high %v3076_v27, %v3076_v27  ;;  %v3092_v50 = vrot.slane %v3076_v27, %v5927_v30  ;;  %v3099_v16 = vrot.slane %v3077_v56, %v5927_v30  ;;  %v3107_v4 = vcombine.high %v3085_v60, %v3085_v60 }
 0x685   :  { %v3163_v37 = vrot.slane %v3085_v60, %v5853_v63 }
 0x686   :  { %v3106_v54 = vrot.slane %v3078_v19, %v5927_v30  ;;  %v3108_v0 = vcombine.high %v3092_v50, %v3092_v50  ;;  %v3109_v23 = vcombine.high %v3099_v16, %v3099_v16  ;;  %v3167_v2 = vrot.slane %v3099_v16, %v5853_v63 }
 0x687   :  { %v3171_v33 = vrot.slane %v3107_v4, %v5853_v63  ;;  %v3179_v51 = vrot.slane %v3092_v50, %v5853_v63  ;;  %v3240_v35 = vadd.f32 %v3163_v37, %v3028_v9  ;;  %v3241_v21 = vadd.f32 %v3163_v37, %v3029_v18 }
 0x688   :  { %v3110_v34 = vcombine.high %v3106_v54, %v3106_v54  ;;  %v3175_v38 = vrot.slane %v3109_v23, %v5853_v63  ;;  %v3183_v48 = vrot.slane %v3106_v54, %v5853_v63  ;;  %v3187_v8 = vrot.slane %v3108_v0, %v5853_v63 }
 0x689   :  { %v3242_v45 = vadd.f32 %v3167_v2, %v3030_v20  ;;  %v3243_v41 = vadd.f32 %v3167_v2, %v3031_v49  ;;  %v3244_v30 = vadd.f32 %v3171_v33, %v3032_v15  ;;  %v3245_v12 = vadd.f32 %v3171_v33, %v3033_v53 }
 0x68a   :  { %v3191_v13 = vrot.slane %v3110_v34, %v5853_v63  ;;  %v3246_v32 = vadd.f32 %v3175_v38, %v3034_v44  ;;  %v3247_v57 = vadd.f32 %v3175_v38, %v3035_v11  ;;  %v3248_v46 = vadd.f32 %v3179_v51, %v3036_v55 }
 0x68b   :  { %v3249_v42 = vadd.f32 %v3179_v51, %v3037_v22  ;;  %v3250_v28 = vadd.f32 %v3183_v48, %v3038_v24  ;;  %v3251_v9 = vadd.f32 %v3183_v48, %v3039_v6  ;;  %v3252_v52 = vadd.f32 %v3187_v8, %v3040_v29 }
 0x68c   :  { %v3253_v18 = vadd.f32 %v3187_v8, %v3041_v3  ;;  %v3254_v43 = vadd.f32 %v3191_v13, %v3042_v62  ;;  %v3255_v17 = vadd.f32 %v3191_v13, %v3043_v14  ;;  %vm3272_vm0 = vcmp.gt.f32.partialorder %v3240_v35, 0.0 }
 0x68d   :  { %vm3273_vm1 = vcmp.gt.f32.partialorder %v3241_v21, 0.0  ;;  %vm3274_vm2 = vcmp.gt.f32.partialorder %v3242_v45, 0.0  ;;  %vm3275_vm3 = vcmp.gt.f32.partialorder %v3243_v41, 0.0  ;;  %vm3276_vm4 = vcmp.gt.f32.partialorder %v3244_v30, 0.0 }
 0x68e   :  { %vm3277_vm5 = vcmp.gt.f32.partialorder %v3245_v12, 0.0  ;;  %vm3278_vm6 = vcmp.gt.f32.partialorder %v3246_v32, 0.0  ;;  %vm3279_vm7 = vcmp.gt.f32.partialorder %v3247_v57, 0.0  ;;  %vm3280_vm8 = vcmp.gt.f32.partialorder %v3248_v46, 0.0 }
 0x68f   :  { %vm3281_vm9 = vcmp.gt.f32.partialorder %v3249_v42, 0.0  ;;  %vm3282_vm10 = vcmp.gt.f32.partialorder %v3250_v28, 0.0  ;;  %vm3283_vm11 = vcmp.gt.f32.partialorder %v3251_v9, 0.0  ;;  %vm3284_vm12 = vcmp.gt.f32.partialorder %v3252_v52, 0.0 }
 0x690   :  { %vm3285_vm13 = vcmp.gt.f32.partialorder %v3253_v18, 0.0  ;;  %vm3286_vm14 = vcmp.gt.f32.partialorder %v3254_v43, 0.0  ;;  %vm3287_vm15 = vcmp.gt.f32.partialorder %v3255_v17, 0.0  ;;  %v3304_v63 = vmul.f32 0.1, %v3240_v35 }
 0x691   :  { %v3305_v20 = vmul.f32 0.1, %v3241_v21  ;;  %v3306_v49 = vmul.f32 0.1, %v3242_v45  ;;  %v3307_v58 = vmul.f32 0.1, %v3243_v41 }
 0x692   :  { %v3308_v15 = vmul.f32 0.1, %v3244_v30  ;;  %v3309_v25 = vmul.f32 0.1, %v3245_v12  ;;  %v3310_v53 = vmul.f32 0.1, %v3246_v32  ;;  %v3336_v36 = vsel %vm3272_vm0, %v3240_v35, %v3304_v63 }
 0x693   :  { %v3311_v44 = vmul.f32 0.1, %v3247_v57  ;;  %v3312_v47 = vmul.f32 0.1, %v3248_v46  ;;  %v3313_v11 = vmul.f32 0.1, %v3249_v42  ;;  %v3337_v26 = vsel %vm3273_vm1, %v3241_v21, %v3305_v20 }
 0x694   :  { %v3314_v55 = vmul.f32 0.1, %v3250_v28  ;;  %v3315_v5 = vmul.f32 0.1, %v3251_v9  ;;  %v3316_v22 = vmul.f32 0.1, %v3252_v52  ;;  %v3338_v40 = vsel %vm3274_vm2, %v3242_v45, %v3306_v49 }
 0x695   :  { %v3317_v24 = vmul.f32 0.1, %v3253_v18  ;;  %v3318_v39 = vmul.f32 0.1, %v3254_v43  ;;  %v3319_v6 = vmul.f32 0.1, %v3255_v17  ;;  %v3339_v1 = vsel %vm3275_vm3, %v3243_v41, %v3307_v58 }
 0x696   :  { %v3340_v29 = vsel %vm3276_vm4, %v3244_v30, %v3308_v15  ;;  %v3341_v10 = vsel %vm3277_vm5, %v3245_v12, %v3309_v25  ;;  %v3342_v3 = vsel %vm3278_vm6, %v3246_v32, %v3310_v53  ;;  %v3343_v31 = vsel %vm3279_vm7, %v3247_v57, %v3311_v44 }
 0x697   :  { %v3344_v62 = vsel %vm3280_vm8, %v3248_v46, %v3312_v47  ;;  %v3345_v7 = vsel %vm3281_vm9, %v3249_v42, %v3313_v11  ;;  %v3346_v14 = vsel %vm3282_vm10, %v3250_v28, %v3314_v55  ;;  %v3347_v61 = vsel %vm3283_vm11, %v3251_v9, %v3315_v5 }
 0x698   :  { %v3348_v59 = vsel %vm3284_vm12, %v3252_v52, %v3316_v22  ;;  %v3349_v27 = vsel %vm3285_vm13, %v3253_v18, %v3317_v24  ;;  %v3350_v56 = vsel %vm3286_vm14, %v3254_v43, %v3318_v39  ;;  %v3351_v60 = vsel %vm3287_vm15, %v3255_v17, %v3319_v6 }
 0x699   :  { %v3662_v19 = vpack.c.bf16 %v3337_v26, %v3336_v36  ;;  %v3667_v50 = vpack.c.bf16 %v3339_v1, %v3338_v40  ;;  %v3672_v16 = vpack.c.bf16 %v3341_v10, %v3340_v29  ;;  %v3677_v4 = vpack.c.bf16 %v3343_v31, %v3342_v3 }
 0x69a   :  { %v3682_v37 = vpack.c.bf16 %v3345_v7, %v3344_v62  ;;  %v3687_v54 = vpack.c.bf16 %v3347_v61, %v3346_v14  ;;  %v3692_v0 = vpack.c.bf16 %v3349_v27, %v3348_v59  ;;  %v3697_v23 = vpack.c.bf16 %v3351_v60, %v3350_v56 }
 0x69b   :  { %3663 = vst [vmem:[%s5741_s7] sm:$0xff] %v3662_v19   ;;  %3739 = vst [vmem:[%s5741_s7 + $0x8] sm:$0xff] %v3667_v50  }
 0x69c   :  { %3740 = vst [vmem:[%s5741_s7 + $0x10] sm:$0xff] %v3672_v16   ;;  %3741 = vst [vmem:[%s5741_s7 + $0x18] sm:$0xff] %v3677_v4  }
 0x69d   :  { %3742 = vst [vmem:[%s5741_s7 + $0x20] sm:$0xff] %v3682_v37   ;;  %3743 = vst [vmem:[%s5741_s7 + $0x28] sm:$0xff] %v3687_v54  }
 0x69e   :  { %3744 = vst [vmem:[%s5741_s7 + $0x30] sm:$0xff] %v3692_v0   ;;  %3745 = vst [vmem:[%s5741_s7 + $0x38] sm:$0xff] %v3697_v23  }

</bundles_post_ra>
